<compile_context>
chip_gen: v7x
topology: tpu7x:2x2x1
jax: 0.10.0
libtpu: 0.0.40
codegen_flags: <defaults>
</compile_context>

<pallas_src>
import functools

import jax
import jax.numpy as jnp
from jax.experimental import pallas as pl
from jax.experimental.pallas import tpu as pltpu

_OUT_LANES = 128  # lane-dense output tile width


def _round_up(n, m):
    return ((n + m - 1) // m) * m


# ----------------------------------------------------------------------------
# Pallas kernel: stacked LSTM + fc head + temporal mean (single invocation)
# ----------------------------------------------------------------------------
def _vcm_kernel(x0_ref, wih0_ref, wihr_ref, whh_ref, b_ref, fcw_ref, fcb_ref,
                out_ref, pre_ref, *, bp, pad):
    num_layers, H, G = whh_ref.shape          # G = 4H
    tp = x0_ref.shape[0] // bp                # padded sequence length
    t_valid = tp - pad                        # frames that feed fc / mean

    # ---- hoisted lane-constant activation vectors --------------------------
    # PyTorch gate order along the 4H lanes is [i, f, g, o]; i/f/o use sigmoid,
    # g uses tanh.  sigmoid(x) = 0.5*tanh(0.5*x) + 0.5, so one EUP tanh covers
    # all gates:  act = s * tanh(s * gates) + b,
    #             s = 0.5 (i,f,o) / 1.0 (g),  b = 0.5 (i,f,o) / 0.0 (g).
    lane = jax.lax.broadcasted_iota(jnp.int32, (1, G), 1)
    is_g = jnp.logical_and(lane >= 2 * H, lane < 3 * H)
    act_scale = jnp.where(is_g, 1.0, 0.5).astype(jnp.float32)   # (1, 4H)
    act_bias = jnp.where(is_g, 0.0, 0.5).astype(jnp.float32)    # (1, 4H)

    col = jax.lax.broadcasted_iota(jnp.int32, (1, _OUT_LANES), 1)
    fcw = fcw_ref[...]                        # (1, H)
    fcb = fcb_ref[...]                        # (1, 1)

    # ---- layer-0 hoisted input projection: one big MXU matmul -------------
    pre_ref[...] = (jnp.dot(x0_ref[...], wih0_ref[...],
                            preferred_element_type=jnp.float32) + b_ref[0])

    # fc-head accumulators (live values; not on the recurrent chain)
    frame_acc = jnp.zeros((bp, _OUT_LANES), jnp.float32)
    val_sum = jnp.zeros((bp, 1), jnp.float32)

    # Layer-to-layer hidden states are passed as per-timestep VALUES (no
    # whole-sequence scratch barrier), so the fully-unrolled single basic
    # block exposes the Tp + L - 1 wavefront to the scheduler: step t of layer
    # l can overlap step t+1 of layer l-1.
    prev_seq = None                           # layer (l-1) hidden per timestep
    for l in range(num_layers):               # static layer loop (unrolled)
        whh = whh_ref[l]                      # (H, 4H), hoisted per layer
        if l > 0:
            wih = wihr_ref[l - 1]             # (H, 4H)
            b_l = b_ref[l]                    # (1, 4H)
        h = jnp.zeros((bp, H), jnp.float32)
        c = jnp.zeros((bp, H), jnp.float32)
        is_last = (l == num_layers - 1)
        cur_seq = []
        for t in range(tp):                   # fully unrolled recurrence
            if l == 0:
                gin = pre_ref[t * bp:(t + 1) * bp, :]          # (bp, 4H)
            else:
                # per-step input projection: depends only on layer l-1's
                # output at time t -> off the critical path (wavefront)
                gin = jnp.dot(prev_seq[t], wih,
                              preferred_element_type=jnp.float32) + b_l
            gates = gin + jnp.dot(h, whh, preferred_element_type=jnp.float32)
            act = act_scale * jnp.tanh(act_scale * gates) + act_bias
            i_g = act[:, 0 * H:1 * H]
            f_g = act[:, 1 * H:2 * H]
            g_g = act[:, 2 * H:3 * H]
            o_g = act[:, 3 * H:4 * H]
            c = f_g * c + i_g * g_g
            h = o_g * jnp.tanh(c)
            if is_last:
                if t >= pad:                  # fused fc head (off the chain)
                    v_t = jnp.sum(h * fcw, axis=-1, keepdims=True) + fcb
                    onehot = (col == (t - pad)).astype(jnp.float32)
                    frame_acc = frame_acc + v_t * onehot
                    val_sum = val_sum + v_t
            else:
                cur_seq.append(h)
        prev_seq = cur_seq

    # ---- single lane-dense (bp, 128) output tile, written once ------------
    # columns [0, t_valid) : per-frame mos ; column t_valid : temporal mean
    mos = val_sum * (1.0 / t_valid)
    out_ref[...] = frame_acc + mos * (col == t_valid).astype(jnp.float32)


def _run_vcm_kernel(x0, wih0, wihr, whh, bias, fcw, fcb, *, bp, pad):
    tb, f_pad = x0.shape                      # Tp * Bp rows
    L, H, G = whh.shape                       # G = 4H
    tp = tb // bp
    kernel = functools.partial(_vcm_kernel, bp=bp, pad=pad)

    # Advisory cost estimate (helps XLA schedule around this latency-bound call)
    flops = (2 * tb * f_pad * G                      # layer-0 hoisted proj
             + L * tp * 2 * bp * H * G               # recurrent matmuls
             + (L - 1) * tp * 2 * bp * H * G)        # upper-layer per-step proj
    transcendentals = 2 * L * tp * bp * G
    bytes_accessed = 4 * (x0.size + wih0.size + wihr.size + whh.size
                          + bias.size + fcw.size + fcb.size + bp * _OUT_LANES)

    vmem = pl.BlockSpec(memory_space=pltpu.MemorySpace.VMEM)
    return pl.pallas_call(
        kernel,
        out_shape=jax.ShapeDtypeStruct((bp, _OUT_LANES), jnp.float32),
        in_specs=[vmem] * 7,
        out_specs=vmem,
        scratch_shapes=[
            pltpu.VMEM((tb, G), jnp.float32),    # layer-0 hoisted projection
        ],
        cost_estimate=pl.CostEstimate(flops=int(flops),
                                      transcendentals=int(transcendentals),
                                      bytes_accessed=int(bytes_accessed)),
    )(x0, wih0, wihr, whh, bias, fcw, fcb)


# ----------------------------------------------------------------------------
# Glue (BatchNorm1d, reflect pad, layout plumbing) in plain JAX
# ----------------------------------------------------------------------------
def _batchnorm1d(x, gamma, beta, eps=1e-5):
    # x: (B, T, F). nn.BatchNorm1d (training mode): per-feature stats over
    # (B, T), biased variance.
    mean = jnp.mean(x, axis=(0, 1), keepdims=True)
    var = jnp.mean((x - mean) ** 2, axis=(0, 1), keepdims=True)
    return (x - mean) / jnp.sqrt(var + eps) * gamma + beta


def _reflect_pad_front(x, pad):
    # F.pad(x, (0, 0, pad, 0), 'reflect') on (B, T, F): prepend `pad` reflected
    # frames along time (indices pad, pad-1, ..., 1).
    return jnp.concatenate([x[:, pad:0:-1, :], x], axis=1)


def vcm_forward(x, params, *, pad):
    # x: (B, T, F) float32 -> (mos (B,), mos_frame (B, T))
    B, T, F_in = x.shape
    bp = 8                                    # pad batch to sublane width
    assert B <= bp
    assert T + 1 <= _OUT_LANES
    f_pad = params["wih0_t"].shape[0]         # feature dim rounded up to 8
    x_bn = _batchnorm1d(x, params["bn_gamma"], params["bn_beta"])
    x_pad = _reflect_pad_front(x_bn, pad)     # (B, Tp, F_in)
    Tp = T + pad
    x_tm = jnp.transpose(x_pad, (1, 0, 2))    # (Tp, B, F_in) time-major
    x0 = jnp.zeros((Tp, bp, f_pad), jnp.float32)
    x0 = x0.at[:, :B, :F_in].set(x_tm).reshape(Tp * bp, f_pad)
    out = _run_vcm_kernel(
        x0, params["wih0_t"], params["wih_rest_t"], params["whh_t"],
        params["bias"], params["fc_w"], params["fc_b"], bp=bp, pad=pad)
    mos_frame = out[:B, :T]                   # (B, T)
    mos = out[:B, T]                          # (B,)
    return mos, mos_frame


# ----------------------------------------------------------------------------
# Pure-JAX reference (same math, no Pallas) for correctness checking
# ----------------------------------------------------------------------------
def vcm_forward_ref(x, params, *, pad):
    B, T, F_in = x.shape
    H = params["fc_w"].shape[1]
    L = params["whh_t"].shape[0]
    f_pad = params["wih0_t"].shape[0]
    x_bn = _batchnorm1d(x, params["bn_gamma"], params["bn_beta"])
    x_pad = _reflect_pad_front(x_bn, pad)
    Tp = T + pad
    seq = jnp.zeros((Tp, B, f_pad), jnp.float32)
    seq = seq.at[:, :, :F_in].set(jnp.transpose(x_pad, (1, 0, 2)))
    for l in range(L):
        wih = params["wih0_t"] if l == 0 else params["wih_rest_t"][l - 1]
        whh = params["whh_t"][l]
        b = params["bias"][l]

        def step(carry, x_t, wih=wih, whh=whh, b=b):
            h, c = carry
            gates = x_t @ wih + h @ whh + b
            i_g = jax.nn.sigmoid(gates[:, 0 * H:1 * H])
            f_g = jax.nn.sigmoid(gates[:, 1 * H:2 * H])
            g_g = jnp.tanh(gates[:, 2 * H:3 * H])
            o_g = jax.nn.sigmoid(gates[:, 3 * H:4 * H])
            c = f_g * c + i_g * g_g
            h = o_g * jnp.tanh(c)
            return (h, c), h

        init = (jnp.zeros((B, H), jnp.float32), jnp.zeros((B, H), jnp.float32))
        _, seq = jax.lax.scan(step, init, seq)
    vals = jnp.sum(seq * params["fc_w"][0][None, None, :], axis=-1)
    vals = vals + params["fc_b"][0, 0]                    # (Tp, B)
    mos_frame = vals[pad:, :].T                           # (B, T)
    mos = mos_frame.mean(axis=1)
    return mos, mos_frame


# ----------------------------------------------------------------------------
# Deterministic parameter construction (synthetic init, torch-like shapes)
# ----------------------------------------------------------------------------
def init_params(key, *, in_feat, hidden, num_layers):
    H = hidden
    f_pad = _round_up(in_feat, 8)             # round feature dim up to sublanes
    keys = jax.random.split(key, 4 + num_layers)
    params = {
        "bn_gamma": 1.0 + 0.1 * jax.random.normal(keys[0], (in_feat,), jnp.float32),
        "bn_beta": 0.1 * jax.random.normal(keys[1], (in_feat,), jnp.float32),
        "fc_w": 0.1 * jax.random.normal(keys[2], (1, H), jnp.float32),
        "fc_b": 0.1 * jax.random.normal(keys[3], (1, 1), jnp.float32),
    }
    wih0 = None
    wihr, whh_t, bias = [], [], []
    for l in range(num_layers):
        k0, k1, k2, k3 = jax.random.split(keys[4 + l], 4)
        d_in = in_feat if l == 0 else H
        w_ih = 0.1 * jax.random.normal(k0, (4 * H, d_in), jnp.float32)
        w_hh = 0.1 * jax.random.normal(k1, (4 * H, H), jnp.float32)
        b_ih = 0.1 * jax.random.normal(k2, (4 * H,), jnp.float32)
        b_hh = 0.1 * jax.random.normal(k3, (4 * H,), jnp.float32)
        if l == 0:
            wih0 = jnp.zeros((f_pad, 4 * H), jnp.float32).at[:in_feat, :].set(w_ih.T)
        else:
            wihr.append(w_ih.T)
        whh_t.append(w_hh.T)
        bias.append((b_ih + b_hh)[None, :])
    params["wih0_t"] = wih0                                   # (F_pad, 4H)
    params["wih_rest_t"] = (jnp.stack(wihr) if wihr
                            else jnp.zeros((1, H, 4 * H), jnp.float32))
    params["whh_t"] = jnp.stack(whh_t)                        # (L, H, 4H)
    params["bias"] = jnp.stack(bias)                          # (L, 1, 4H)
    return params


if __name__ == "__main__":
    # Small shapes consistent with the module: 12 VMAF-style features,
    # hidden=32, 2 LSTM layers, reflect pad of 4 frames, seq len 8, batch 2.
    B, T = 2, 8
    IN_FEAT = 12        # len(features) in VcmNet
    HIDDEN = 32
    NUM_LAYERS = 2
    PAD = 4             # must be < T for reflect padding

    key = jax.random.PRNGKey(0)
    k_param, k_x = jax.random.split(key)
    params = init_params(k_param, in_feat=IN_FEAT, hidden=HIDDEN,
                         num_layers=NUM_LAYERS)
    x = jax.random.normal(k_x, (B, T, IN_FEAT), jnp.float32)

    mos, mos_frame = jax.jit(
        functools.partial(vcm_forward, pad=PAD))(x, params)
    jax.block_until_ready((mos, mos_frame))

    mos_ref, mos_frame_ref = jax.jit(
        functools.partial(vcm_forward_ref, pad=PAD))(x, params)
    jax.block_until_ready((mos_ref, mos_frame_ref))

    assert mos.shape == (B,) and mos_frame.shape == (B, T)
    assert jnp.allclose(mos_frame, mos_frame_ref, atol=2e-3, rtol=2e-3)
    assert jnp.allclose(mos, mos_ref, atol=2e-3, rtol=2e-3)
    print("KERNEL_OK")
</pallas_src>

<mosaic_0001>
module attributes {stable_mosaic.version = 11 : i64} {
  func.func @_vcm_kernel(%arg0: memref<96x16xf32, #tpu.memory_space<vmem>>, %arg1: memref<16x128xf32, #tpu.memory_space<vmem>>, %arg2: memref<1x32x128xf32, #tpu.memory_space<vmem>>, %arg3: memref<2x32x128xf32, #tpu.memory_space<vmem>>, %arg4: memref<2x1x128xf32, #tpu.memory_space<vmem>>, %arg5: memref<1x32xf32, #tpu.memory_space<vmem>>, %arg6: memref<1x1xf32, #tpu.memory_space<vmem>>, %arg7: memref<8x128xf32, #tpu.memory_space<vmem>>, %arg8: memref<96x128xf32, #tpu.memory_space<vmem>>) attributes {dimension_semantics = [], scalar_prefetch = 0 : i64, scratch_operands = 1 : i64, tpu.core_type = #tpu.core_type<tc>} {
    %0 = tpu.iota {dimensions = array<i32: 1>} : vector<1x128xi32>
    %c64_i32 = arith.constant 64 : i32
    %1 = vector.broadcast %c64_i32 : i32 to vector<1x128xi32>
    %2 = arith.cmpi sge, %0, %1 : vector<1x128xi32>
    %c96_i32 = arith.constant 96 : i32
    %3 = vector.broadcast %c96_i32 : i32 to vector<1x128xi32>
    %4 = arith.cmpi slt, %0, %3 : vector<1x128xi32>
    %5 = arith.andi %2, %4 : vector<1x128xi1>
    %cst = arith.constant 1.000000e+00 : f32
    %cst_0 = arith.constant 5.000000e-01 : f32
    %6 = vector.broadcast %cst : f32 to vector<1x128xf32>
    %7 = vector.broadcast %cst_0 : f32 to vector<1x128xf32>
    %8 = arith.select %5, %6, %7 : vector<1x128xi1>, vector<1x128xf32>
    %cst_1 = arith.constant 0.000000e+00 : f32
    %cst_2 = arith.constant 5.000000e-01 : f32
    %9 = vector.broadcast %cst_1 : f32 to vector<1x128xf32>
    %10 = vector.broadcast %cst_2 : f32 to vector<1x128xf32>
    %11 = arith.select %5, %9, %10 : vector<1x128xi1>, vector<1x128xf32>
    %12 = tpu.iota {dimensions = array<i32: 1>} : vector<1x128xi32>
    %c0 = arith.constant 0 : index
    %c0_3 = arith.constant 0 : index
    %13 = vector.load %arg5[%c0, %c0_3] : memref<1x32xf32, #tpu.memory_space<vmem>>, vector<1x32xf32>
    %c0_4 = arith.constant 0 : index
    %c0_5 = arith.constant 0 : index
    %14 = vector.load %arg6[%c0_4, %c0_5] : memref<1x1xf32, #tpu.memory_space<vmem>>, vector<1x1xf32>
    %c0_6 = arith.constant 0 : index
    %c0_7 = arith.constant 0 : index
    %15 = vector.load %arg0[%c0_6, %c0_7] : memref<96x16xf32, #tpu.memory_space<vmem>>, vector<96x16xf32>
    %c0_8 = arith.constant 0 : index
    %c0_9 = arith.constant 0 : index
    %16 = vector.load %arg1[%c0_8, %c0_9] : memref<16x128xf32, #tpu.memory_space<vmem>>, vector<16x128xf32>
    %cst_10 = arith.constant dense<0.000000e+00> : vector<96x128xf32>
    %17 = tpu.matmul %15, %16, %cst_10 {dimension_numbers = #tpu.dot_dimension_numbers<[1], [0], [0], [1], [0, 0, 1, 1], [], []>} : vector<96x16xf32>, vector<16x128xf32>, vector<96x128xf32> -> vector<96x128xf32>
    %c0_11 = arith.constant 0 : index
    %c0_12 = arith.constant 0 : index
    %c0_13 = arith.constant 0 : index
    %18 = vector.load %arg4[%c0_11, %c0_12, %c0_13] : memref<2x1x128xf32, #tpu.memory_space<vmem>>, vector<1x1x128xf32>
    %19 = vector.shape_cast %18 : vector<1x1x128xf32> to vector<1x128xf32>
    %20 = vector.broadcast %19 : vector<1x128xf32> to vector<96x128xf32>
    %21 = arith.addf %17, %20 : vector<96x128xf32>
    %c0_14 = arith.constant 0 : index
    %c0_15 = arith.constant 0 : index
    %22 = vector.load %arg8[%c0_14, %c0_15] : memref<96x128xf32, #tpu.memory_space<vmem>>, vector<96x128xf32>
    tpu.vector_store %arg8[%c0_14, %c0_15], %21 {strides = array<i32>} : memref<96x128xf32, #tpu.memory_space<vmem>>, vector<96x128xf32>,
    %cst_16 = arith.constant 0.000000e+00 : f32
    %23 = vector.broadcast %cst_16 : f32 to vector<8x128xf32>
    %cst_17 = arith.constant 0.000000e+00 : f32
    %24 = vector.broadcast %cst_17 : f32 to vector<8x1xf32>
    %c0_18 = arith.constant 0 : index
    %c0_19 = arith.constant 0 : index
    %c0_20 = arith.constant 0 : index
    %25 = vector.load %arg3[%c0_18, %c0_19, %c0_20] : memref<2x32x128xf32, #tpu.memory_space<vmem>>, vector<1x32x128xf32>
    %26 = vector.shape_cast %25 : vector<1x32x128xf32> to vector<32x128xf32>
    %cst_21 = arith.constant 0.000000e+00 : f32
    %27 = vector.broadcast %cst_21 : f32 to vector<8x32xf32>
    %cst_22 = arith.constant 0.000000e+00 : f32
    %28 = vector.broadcast %cst_22 : f32 to vector<8x32xf32>
    %c0_23 = arith.constant 0 : index
    %c0_24 = arith.constant 0 : index
    %29 = vector.load %arg8[%c0_23, %c0_24] : memref<96x128xf32, #tpu.memory_space<vmem>>, vector<8x128xf32>
    %cst_25 = arith.constant dense<0.000000e+00> : vector<8x128xf32>
    %30 = tpu.matmul %27, %26, %cst_25 {dimension_numbers = #tpu.dot_dimension_numbers<[1], [0], [0], [1], [0, 0, 1, 1], [], []>} : vector<8x32xf32>, vector<32x128xf32>, vector<8x128xf32> -> vector<8x128xf32>
    %31 = arith.addf %29, %30 : vector<8x128xf32>
    %32 = vector.broadcast %8 : vector<1x128xf32> to vector<8x128xf32>
    %33 = arith.mulf %32, %31 : vector<8x128xf32>
    %34 = math.tanh %33 : vector<8x128xf32>
    %35 = vector.broadcast %8 : vector<1x128xf32> to vector<8x128xf32>
    %36 = arith.mulf %35, %34 : vector<8x128xf32>
    %37 = vector.broadcast %11 : vector<1x128xf32> to vector<8x128xf32>
    %38 = arith.addf %36, %37 : vector<8x128xf32>
    %39 = vector.extract_strided_slice %38 {offsets = [0, 0], sizes = [8, 32], strides = [1, 1]} : vector<8x128xf32> to vector<8x32xf32>
    %40 = vector.extract_strided_slice %38 {offsets = [0, 32], sizes = [8, 32], strides = [1, 1]} : vector<8x128xf32> to vector<8x32xf32>
    %41 = vector.extract_strided_slice %38 {offsets = [0, 64], sizes = [8, 32], strides = [1, 1]} : vector<8x128xf32> to vector<8x32xf32>
    %42 = vector.extract_strided_slice %38 {offsets = [0, 96], sizes = [8, 32], strides = [1, 1]} : vector<8x128xf32> to vector<8x32xf32>
    %43 = arith.mulf %40, %28 : vector<8x32xf32>
    %44 = arith.mulf %39, %41 : vector<8x32xf32>
    %45 = arith.addf %43, %44 : vector<8x32xf32>
    %46 = math.tanh %45 : vector<8x32xf32>
    %47 = arith.mulf %42, %46 : vector<8x32xf32>
    %c8 = arith.constant 8 : index
    %c0_26 = arith.constant 0 : index
    %48 = vector.load %arg8[%c8, %c0_26] : memref<96x128xf32, #tpu.memory_space<vmem>>, vector<8x128xf32>
    %cst_27 = arith.constant dense<0.000000e+00> : vector<8x128xf32>
    %49 = tpu.matmul %47, %26, %cst_27 {dimension_numbers = #tpu.dot_dimension_numbers<[1], [0], [0], [1], [0, 0, 1, 1], [], []>} : vector<8x32xf32>, vector<32x128xf32>, vector<8x128xf32> -> vector<8x128xf32>
    %50 = arith.addf %48, %49 : vector<8x128xf32>
    %51 = vector.broadcast %8 : vector<1x128xf32> to vector<8x128xf32>
    %52 = arith.mulf %51, %50 : vector<8x128xf32>
    %53 = math.tanh %52 : vector<8x128xf32>
    %54 = vector.broadcast %8 : vector<1x128xf32> to vector<8x128xf32>
    %55 = arith.mulf %54, %53 : vector<8x128xf32>
    %56 = vector.broadcast %11 : vector<1x128xf32> to vector<8x128xf32>
    %57 = arith.addf %55, %56 : vector<8x128xf32>
    %58 = vector.extract_strided_slice %57 {offsets = [0, 0], sizes = [8, 32], strides = [1, 1]} : vector<8x128xf32> to vector<8x32xf32>
    %59 = vector.extract_strided_slice %57 {offsets = [0, 32], sizes = [8, 32], strides = [1, 1]} : vector<8x128xf32> to vector<8x32xf32>
    %60 = vector.extract_strided_slice %57 {offsets = [0, 64], sizes = [8, 32], strides = [1, 1]} : vector<8x128xf32> to vector<8x32xf32>
    %61 = vector.extract_strided_slice %57 {offsets = [0, 96], sizes = [8, 32], strides = [1, 1]} : vector<8x128xf32> to vector<8x32xf32>
    %62 = arith.mulf %59, %45 : vector<8x32xf32>
    %63 = arith.mulf %58, %60 : vector<8x32xf32>
    %64 = arith.addf %62, %63 : vector<8x32xf32>
    %65 = math.tanh %64 : vector<8x32xf32>
    %66 = arith.mulf %61, %65 : vector<8x32xf32>
    %c16 = arith.constant 16 : index
    %c0_28 = arith.constant 0 : index
    %67 = vector.load %arg8[%c16, %c0_28] : memref<96x128xf32, #tpu.memory_space<vmem>>, vector<8x128xf32>
    %cst_29 = arith.constant dense<0.000000e+00> : vector<8x128xf32>
    %68 = tpu.matmul %66, %26, %cst_29 {dimension_numbers = #tpu.dot_dimension_numbers<[1], [0], [0], [1], [0, 0, 1, 1], [], []>} : vector<8x32xf32>, vector<32x128xf32>, vector<8x128xf32> -> vector<8x128xf32>
    %69 = arith.addf %67, %68 : vector<8x128xf32>
    %70 = vector.broadcast %8 : vector<1x128xf32> to vector<8x128xf32>
    %71 = arith.mulf %70, %69 : vector<8x128xf32>
    %72 = math.tanh %71 : vector<8x128xf32>
    %73 = vector.broadcast %8 : vector<1x128xf32> to vector<8x128xf32>
    %74 = arith.mulf %73, %72 : vector<8x128xf32>
    %75 = vector.broadcast %11 : vector<1x128xf32> to vector<8x128xf32>
    %76 = arith.addf %74, %75 : vector<8x128xf32>
    %77 = vector.extract_strided_slice %76 {offsets = [0, 0], sizes = [8, 32], strides = [1, 1]} : vector<8x128xf32> to vector<8x32xf32>
    %78 = vector.extract_strided_slice %76 {offsets = [0, 32], sizes = [8, 32], strides = [1, 1]} : vector<8x128xf32> to vector<8x32xf32>
    %79 = vector.extract_strided_slice %76 {offsets = [0, 64], sizes = [8, 32], strides = [1, 1]} : vector<8x128xf32> to vector<8x32xf32>
    %80 = vector.extract_strided_slice %76 {offsets = [0, 96], sizes = [8, 32], strides = [1, 1]} : vector<8x128xf32> to vector<8x32xf32>
    %81 = arith.mulf %78, %64 : vector<8x32xf32>
    %82 = arith.mulf %77, %79 : vector<8x32xf32>
    %83 = arith.addf %81, %82 : vector<8x32xf32>
    %84 = math.tanh %83 : vector<8x32xf32>
    %85 = arith.mulf %80, %84 : vector<8x32xf32>
    %c24 = arith.constant 24 : index
    %c0_30 = arith.constant 0 : index
    %86 = vector.load %arg8[%c24, %c0_30] : memref<96x128xf32, #tpu.memory_space<vmem>>, vector<8x128xf32>
    %cst_31 = arith.constant dense<0.000000e+00> : vector<8x128xf32>
    %87 = tpu.matmul %85, %26, %cst_31 {dimension_numbers = #tpu.dot_dimension_numbers<[1], [0], [0], [1], [0, 0, 1, 1], [], []>} : vector<8x32xf32>, vector<32x128xf32>, vector<8x128xf32> -> vector<8x128xf32>
    %88 = arith.addf %86, %87 : vector<8x128xf32>
    %89 = vector.broadcast %8 : vector<1x128xf32> to vector<8x128xf32>
    %90 = arith.mulf %89, %88 : vector<8x128xf32>
    %91 = math.tanh %90 : vector<8x128xf32>
    %92 = vector.broadcast %8 : vector<1x128xf32> to vector<8x128xf32>
    %93 = arith.mulf %92, %91 : vector<8x128xf32>
    %94 = vector.broadcast %11 : vector<1x128xf32> to vector<8x128xf32>
    %95 = arith.addf %93, %94 : vector<8x128xf32>
    %96 = vector.extract_strided_slice %95 {offsets = [0, 0], sizes = [8, 32], strides = [1, 1]} : vector<8x128xf32> to vector<8x32xf32>
    %97 = vector.extract_strided_slice %95 {offsets = [0, 32], sizes = [8, 32], strides = [1, 1]} : vector<8x128xf32> to vector<8x32xf32>
    %98 = vector.extract_strided_slice %95 {offsets = [0, 64], sizes = [8, 32], strides = [1, 1]} : vector<8x128xf32> to vector<8x32xf32>
    %99 = vector.extract_strided_slice %95 {offsets = [0, 96], sizes = [8, 32], strides = [1, 1]} : vector<8x128xf32> to vector<8x32xf32>
    %100 = arith.mulf %97, %83 : vector<8x32xf32>
    %101 = arith.mulf %96, %98 : vector<8x32xf32>
    %102 = arith.addf %100, %101 : vector<8x32xf32>
    %103 = math.tanh %102 : vector<8x32xf32>
    %104 = arith.mulf %99, %103 : vector<8x32xf32>
    %c32 = arith.constant 32 : index
    %c0_32 = arith.constant 0 : index
    %105 = vector.load %arg8[%c32, %c0_32] : memref<96x128xf32, #tpu.memory_space<vmem>>, vector<8x128xf32>
    %cst_33 = arith.constant dense<0.000000e+00> : vector<8x128xf32>
    %106 = tpu.matmul %104, %26, %cst_33 {dimension_numbers = #tpu.dot_dimension_numbers<[1], [0], [0], [1], [0, 0, 1, 1], [], []>} : vector<8x32xf32>, vector<32x128xf32>, vector<8x128xf32> -> vector<8x128xf32>
    %107 = arith.addf %105, %106 : vector<8x128xf32>
    %108 = vector.broadcast %8 : vector<1x128xf32> to vector<8x128xf32>
    %109 = arith.mulf %108, %107 : vector<8x128xf32>
    %110 = math.tanh %109 : vector<8x128xf32>
    %111 = vector.broadcast %8 : vector<1x128xf32> to vector<8x128xf32>
    %112 = arith.mulf %111, %110 : vector<8x128xf32>
    %113 = vector.broadcast %11 : vector<1x128xf32> to vector<8x128xf32>
    %114 = arith.addf %112, %113 : vector<8x128xf32>
    %115 = vector.extract_strided_slice %114 {offsets = [0, 0], sizes = [8, 32], strides = [1, 1]} : vector<8x128xf32> to vector<8x32xf32>
    %116 = vector.extract_strided_slice %114 {offsets = [0, 32], sizes = [8, 32], strides = [1, 1]} : vector<8x128xf32> to vector<8x32xf32>
    %117 = vector.extract_strided_slice %114 {offsets = [0, 64], sizes = [8, 32], strides = [1, 1]} : vector<8x128xf32> to vector<8x32xf32>
    %118 = vector.extract_strided_slice %114 {offsets = [0, 96], sizes = [8, 32], strides = [1, 1]} : vector<8x128xf32> to vector<8x32xf32>
    %119 = arith.mulf %116, %102 : vector<8x32xf32>
    %120 = arith.mulf %115, %117 : vector<8x32xf32>
    %121 = arith.addf %119, %120 : vector<8x32xf32>
    %122 = math.tanh %121 : vector<8x32xf32>
    %123 = arith.mulf %118, %122 : vector<8x32xf32>
    %c40 = arith.constant 40 : index
    %c0_34 = arith.constant 0 : index
    %124 = vector.load %arg8[%c40, %c0_34] : memref<96x128xf32, #tpu.memory_space<vmem>>, vector<8x128xf32>
    %cst_35 = arith.constant dense<0.000000e+00> : vector<8x128xf32>
    %125 = tpu.matmul %123, %26, %cst_35 {dimension_numbers = #tpu.dot_dimension_numbers<[1], [0], [0], [1], [0, 0, 1, 1], [], []>} : vector<8x32xf32>, vector<32x128xf32>, vector<8x128xf32> -> vector<8x128xf32>
    %126 = arith.addf %124, %125 : vector<8x128xf32>
    %127 = vector.broadcast %8 : vector<1x128xf32> to vector<8x128xf32>
    %128 = arith.mulf %127, %126 : vector<8x128xf32>
    %129 = math.tanh %128 : vector<8x128xf32>
    %130 = vector.broadcast %8 : vector<1x128xf32> to vector<8x128xf32>
    %131 = arith.mulf %130, %129 : vector<8x128xf32>
    %132 = vector.broadcast %11 : vector<1x128xf32> to vector<8x128xf32>
    %133 = arith.addf %131, %132 : vector<8x128xf32>
    %134 = vector.extract_strided_slice %133 {offsets = [0, 0], sizes = [8, 32], strides = [1, 1]} : vector<8x128xf32> to vector<8x32xf32>
    %135 = vector.extract_strided_slice %133 {offsets = [0, 32], sizes = [8, 32], strides = [1, 1]} : vector<8x128xf32> to vector<8x32xf32>
    %136 = vector.extract_strided_slice %133 {offsets = [0, 64], sizes = [8, 32], strides = [1, 1]} : vector<8x128xf32> to vector<8x32xf32>
    %137 = vector.extract_strided_slice %133 {offsets = [0, 96], sizes = [8, 32], strides = [1, 1]} : vector<8x128xf32> to vector<8x32xf32>
    %138 = arith.mulf %135, %121 : vector<8x32xf32>
    %139 = arith.mulf %134, %136 : vector<8x32xf32>
    %140 = arith.addf %138, %139 : vector<8x32xf32>
    %141 = math.tanh %140 : vector<8x32xf32>
    %142 = arith.mulf %137, %141 : vector<8x32xf32>
    %c48 = arith.constant 48 : index
    %c0_36 = arith.constant 0 : index
    %143 = vector.load %arg8[%c48, %c0_36] : memref<96x128xf32, #tpu.memory_space<vmem>>, vector<8x128xf32>
    %cst_37 = arith.constant dense<0.000000e+00> : vector<8x128xf32>
    %144 = tpu.matmul %142, %26, %cst_37 {dimension_numbers = #tpu.dot_dimension_numbers<[1], [0], [0], [1], [0, 0, 1, 1], [], []>} : vector<8x32xf32>, vector<32x128xf32>, vector<8x128xf32> -> vector<8x128xf32>
    %145 = arith.addf %143, %144 : vector<8x128xf32>
    %146 = vector.broadcast %8 : vector<1x128xf32> to vector<8x128xf32>
    %147 = arith.mulf %146, %145 : vector<8x128xf32>
    %148 = math.tanh %147 : vector<8x128xf32>
    %149 = vector.broadcast %8 : vector<1x128xf32> to vector<8x128xf32>
    %150 = arith.mulf %149, %148 : vector<8x128xf32>
    %151 = vector.broadcast %11 : vector<1x128xf32> to vector<8x128xf32>
    %152 = arith.addf %150, %151 : vector<8x128xf32>
    %153 = vector.extract_strided_slice %152 {offsets = [0, 0], sizes = [8, 32], strides = [1, 1]} : vector<8x128xf32> to vector<8x32xf32>
    %154 = vector.extract_strided_slice %152 {offsets = [0, 32], sizes = [8, 32], strides = [1, 1]} : vector<8x128xf32> to vector<8x32xf32>
    %155 = vector.extract_strided_slice %152 {offsets = [0, 64], sizes = [8, 32], strides = [1, 1]} : vector<8x128xf32> to vector<8x32xf32>
    %156 = vector.extract_strided_slice %152 {offsets = [0, 96], sizes = [8, 32], strides = [1, 1]} : vector<8x128xf32> to vector<8x32xf32>
    %157 = arith.mulf %154, %140 : vector<8x32xf32>
    %158 = arith.mulf %153, %155 : vector<8x32xf32>
    %159 = arith.addf %157, %158 : vector<8x32xf32>
    %160 = math.tanh %159 : vector<8x32xf32>
    %161 = arith.mulf %156, %160 : vector<8x32xf32>
    %c56 = arith.constant 56 : index
    %c0_38 = arith.constant 0 : index
    %162 = vector.load %arg8[%c56, %c0_38] : memref<96x128xf32, #tpu.memory_space<vmem>>, vector<8x128xf32>
    %cst_39 = arith.constant dense<0.000000e+00> : vector<8x128xf32>
    %163 = tpu.matmul %161, %26, %cst_39 {dimension_numbers = #tpu.dot_dimension_numbers<[1], [0], [0], [1], [0, 0, 1, 1], [], []>} : vector<8x32xf32>, vector<32x128xf32>, vector<8x128xf32> -> vector<8x128xf32>
    %164 = arith.addf %162, %163 : vector<8x128xf32>
    %165 = vector.broadcast %8 : vector<1x128xf32> to vector<8x128xf32>
    %166 = arith.mulf %165, %164 : vector<8x128xf32>
    %167 = math.tanh %166 : vector<8x128xf32>
    %168 = vector.broadcast %8 : vector<1x128xf32> to vector<8x128xf32>
    %169 = arith.mulf %168, %167 : vector<8x128xf32>
    %170 = vector.broadcast %11 : vector<1x128xf32> to vector<8x128xf32>
    %171 = arith.addf %169, %170 : vector<8x128xf32>
    %172 = vector.extract_strided_slice %171 {offsets = [0, 0], sizes = [8, 32], strides = [1, 1]} : vector<8x128xf32> to vector<8x32xf32>
    %173 = vector.extract_strided_slice %171 {offsets = [0, 32], sizes = [8, 32], strides = [1, 1]} : vector<8x128xf32> to vector<8x32xf32>
    %174 = vector.extract_strided_slice %171 {offsets = [0, 64], sizes = [8, 32], strides = [1, 1]} : vector<8x128xf32> to vector<8x32xf32>
    %175 = vector.extract_strided_slice %171 {offsets = [0, 96], sizes = [8, 32], strides = [1, 1]} : vector<8x128xf32> to vector<8x32xf32>
    %176 = arith.mulf %173, %159 : vector<8x32xf32>
    %177 = arith.mulf %172, %174 : vector<8x32xf32>
    %178 = arith.addf %176, %177 : vector<8x32xf32>
    %179 = math.tanh %178 : vector<8x32xf32>
    %180 = arith.mulf %175, %179 : vector<8x32xf32>
    %c64 = arith.constant 64 : index
    %c0_40 = arith.constant 0 : index
    %181 = vector.load %arg8[%c64, %c0_40] : memref<96x128xf32, #tpu.memory_space<vmem>>, vector<8x128xf32>
    %cst_41 = arith.constant dense<0.000000e+00> : vector<8x128xf32>
    %182 = tpu.matmul %180, %26, %cst_41 {dimension_numbers = #tpu.dot_dimension_numbers<[1], [0], [0], [1], [0, 0, 1, 1], [], []>} : vector<8x32xf32>, vector<32x128xf32>, vector<8x128xf32> -> vector<8x128xf32>
    %183 = arith.addf %181, %182 : vector<8x128xf32>
    %184 = vector.broadcast %8 : vector<1x128xf32> to vector<8x128xf32>
    %185 = arith.mulf %184, %183 : vector<8x128xf32>
    %186 = math.tanh %185 : vector<8x128xf32>
    %187 = vector.broadcast %8 : vector<1x128xf32> to vector<8x128xf32>
    %188 = arith.mulf %187, %186 : vector<8x128xf32>
    %189 = vector.broadcast %11 : vector<1x128xf32> to vector<8x128xf32>
    %190 = arith.addf %188, %189 : vector<8x128xf32>
    %191 = vector.extract_strided_slice %190 {offsets = [0, 0], sizes = [8, 32], strides = [1, 1]} : vector<8x128xf32> to vector<8x32xf32>
    %192 = vector.extract_strided_slice %190 {offsets = [0, 32], sizes = [8, 32], strides = [1, 1]} : vector<8x128xf32> to vector<8x32xf32>
    %193 = vector.extract_strided_slice %190 {offsets = [0, 64], sizes = [8, 32], strides = [1, 1]} : vector<8x128xf32> to vector<8x32xf32>
    %194 = vector.extract_strided_slice %190 {offsets = [0, 96], sizes = [8, 32], strides = [1, 1]} : vector<8x128xf32> to vector<8x32xf32>
    %195 = arith.mulf %192, %178 : vector<8x32xf32>
    %196 = arith.mulf %191, %193 : vector<8x32xf32>
    %197 = arith.addf %195, %196 : vector<8x32xf32>
    %198 = math.tanh %197 : vector<8x32xf32>
    %199 = arith.mulf %194, %198 : vector<8x32xf32>
    %c72 = arith.constant 72 : index
    %c0_42 = arith.constant 0 : index
    %200 = vector.load %arg8[%c72, %c0_42] : memref<96x128xf32, #tpu.memory_space<vmem>>, vector<8x128xf32>
    %cst_43 = arith.constant dense<0.000000e+00> : vector<8x128xf32>
    %201 = tpu.matmul %199, %26, %cst_43 {dimension_numbers = #tpu.dot_dimension_numbers<[1], [0], [0], [1], [0, 0, 1, 1], [], []>} : vector<8x32xf32>, vector<32x128xf32>, vector<8x128xf32> -> vector<8x128xf32>
    %202 = arith.addf %200, %201 : vector<8x128xf32>
    %203 = vector.broadcast %8 : vector<1x128xf32> to vector<8x128xf32>
    %204 = arith.mulf %203, %202 : vector<8x128xf32>
    %205 = math.tanh %204 : vector<8x128xf32>
    %206 = vector.broadcast %8 : vector<1x128xf32> to vector<8x128xf32>
    %207 = arith.mulf %206, %205 : vector<8x128xf32>
    %208 = vector.broadcast %11 : vector<1x128xf32> to vector<8x128xf32>
    %209 = arith.addf %207, %208 : vector<8x128xf32>
    %210 = vector.extract_strided_slice %209 {offsets = [0, 0], sizes = [8, 32], strides = [1, 1]} : vector<8x128xf32> to vector<8x32xf32>
    %211 = vector.extract_strided_slice %209 {offsets = [0, 32], sizes = [8, 32], strides = [1, 1]} : vector<8x128xf32> to vector<8x32xf32>
    %212 = vector.extract_strided_slice %209 {offsets = [0, 64], sizes = [8, 32], strides = [1, 1]} : vector<8x128xf32> to vector<8x32xf32>
    %213 = vector.extract_strided_slice %209 {offsets = [0, 96], sizes = [8, 32], strides = [1, 1]} : vector<8x128xf32> to vector<8x32xf32>
    %214 = arith.mulf %211, %197 : vector<8x32xf32>
    %215 = arith.mulf %210, %212 : vector<8x32xf32>
    %216 = arith.addf %214, %215 : vector<8x32xf32>
    %217 = math.tanh %216 : vector<8x32xf32>
    %218 = arith.mulf %213, %217 : vector<8x32xf32>
    %c80 = arith.constant 80 : index
    %c0_44 = arith.constant 0 : index
    %219 = vector.load %arg8[%c80, %c0_44] : memref<96x128xf32, #tpu.memory_space<vmem>>, vector<8x128xf32>
    %cst_45 = arith.constant dense<0.000000e+00> : vector<8x128xf32>
    %220 = tpu.matmul %218, %26, %cst_45 {dimension_numbers = #tpu.dot_dimension_numbers<[1], [0], [0], [1], [0, 0, 1, 1], [], []>} : vector<8x32xf32>, vector<32x128xf32>, vector<8x128xf32> -> vector<8x128xf32>
    %221 = arith.addf %219, %220 : vector<8x128xf32>
    %222 = vector.broadcast %8 : vector<1x128xf32> to vector<8x128xf32>
    %223 = arith.mulf %222, %221 : vector<8x128xf32>
    %224 = math.tanh %223 : vector<8x128xf32>
    %225 = vector.broadcast %8 : vector<1x128xf32> to vector<8x128xf32>
    %226 = arith.mulf %225, %224 : vector<8x128xf32>
    %227 = vector.broadcast %11 : vector<1x128xf32> to vector<8x128xf32>
    %228 = arith.addf %226, %227 : vector<8x128xf32>
    %229 = vector.extract_strided_slice %228 {offsets = [0, 0], sizes = [8, 32], strides = [1, 1]} : vector<8x128xf32> to vector<8x32xf32>
    %230 = vector.extract_strided_slice %228 {offsets = [0, 32], sizes = [8, 32], strides = [1, 1]} : vector<8x128xf32> to vector<8x32xf32>
    %231 = vector.extract_strided_slice %228 {offsets = [0, 64], sizes = [8, 32], strides = [1, 1]} : vector<8x128xf32> to vector<8x32xf32>
    %232 = vector.extract_strided_slice %228 {offsets = [0, 96], sizes = [8, 32], strides = [1, 1]} : vector<8x128xf32> to vector<8x32xf32>
    %233 = arith.mulf %230, %216 : vector<8x32xf32>
    %234 = arith.mulf %229, %231 : vector<8x32xf32>
    %235 = arith.addf %233, %234 : vector<8x32xf32>
    %236 = math.tanh %235 : vector<8x32xf32>
    %237 = arith.mulf %232, %236 : vector<8x32xf32>
    %c88 = arith.constant 88 : index
    %c0_46 = arith.constant 0 : index
    %238 = vector.load %arg8[%c88, %c0_46] : memref<96x128xf32, #tpu.memory_space<vmem>>, vector<8x128xf32>
    %cst_47 = arith.constant dense<0.000000e+00> : vector<8x128xf32>
    %239 = tpu.matmul %237, %26, %cst_47 {dimension_numbers = #tpu.dot_dimension_numbers<[1], [0], [0], [1], [0, 0, 1, 1], [], []>} : vector<8x32xf32>, vector<32x128xf32>, vector<8x128xf32> -> vector<8x128xf32>
    %240 = arith.addf %238, %239 : vector<8x128xf32>
    %241 = vector.broadcast %8 : vector<1x128xf32> to vector<8x128xf32>
    %242 = arith.mulf %241, %240 : vector<8x128xf32>
    %243 = math.tanh %242 : vector<8x128xf32>
    %244 = vector.broadcast %8 : vector<1x128xf32> to vector<8x128xf32>
    %245 = arith.mulf %244, %243 : vector<8x128xf32>
    %246 = vector.broadcast %11 : vector<1x128xf32> to vector<8x128xf32>
    %247 = arith.addf %245, %246 : vector<8x128xf32>
    %248 = vector.extract_strided_slice %247 {offsets = [0, 0], sizes = [8, 32], strides = [1, 1]} : vector<8x128xf32> to vector<8x32xf32>
    %249 = vector.extract_strided_slice %247 {offsets = [0, 32], sizes = [8, 32], strides = [1, 1]} : vector<8x128xf32> to vector<8x32xf32>
    %250 = vector.extract_strided_slice %247 {offsets = [0, 64], sizes = [8, 32], strides = [1, 1]} : vector<8x128xf32> to vector<8x32xf32>
    %251 = vector.extract_strided_slice %247 {offsets = [0, 96], sizes = [8, 32], strides = [1, 1]} : vector<8x128xf32> to vector<8x32xf32>
    %252 = arith.mulf %249, %235 : vector<8x32xf32>
    %253 = arith.mulf %248, %250 : vector<8x32xf32>
    %254 = arith.addf %252, %253 : vector<8x32xf32>
    %255 = math.tanh %254 : vector<8x32xf32>
    %256 = arith.mulf %251, %255 : vector<8x32xf32>
    %c1 = arith.constant 1 : index
    %c0_48 = arith.constant 0 : index
    %c0_49 = arith.constant 0 : index
    %257 = vector.load %arg3[%c1, %c0_48, %c0_49] : memref<2x32x128xf32, #tpu.memory_space<vmem>>, vector<1x32x128xf32>
    %258 = vector.shape_cast %257 : vector<1x32x128xf32> to vector<32x128xf32>
    %c0_50 = arith.constant 0 : index
    %c0_51 = arith.constant 0 : index
    %c0_52 = arith.constant 0 : index
    %259 = vector.load %arg2[%c0_50, %c0_51, %c0_52] : memref<1x32x128xf32, #tpu.memory_space<vmem>>, vector<1x32x128xf32>
    %260 = vector.shape_cast %259 : vector<1x32x128xf32> to vector<32x128xf32>
    %c1_53 = arith.constant 1 : index
    %c0_54 = arith.constant 0 : index
    %c0_55 = arith.constant 0 : index
    %261 = vector.load %arg4[%c1_53, %c0_54, %c0_55] : memref<2x1x128xf32, #tpu.memory_space<vmem>>, vector<1x1x128xf32>
    %262 = vector.shape_cast %261 : vector<1x1x128xf32> to vector<1x128xf32>
    %cst_56 = arith.constant 0.000000e+00 : f32
    %263 = vector.broadcast %cst_56 : f32 to vector<8x32xf32>
    %cst_57 = arith.constant 0.000000e+00 : f32
    %264 = vector.broadcast %cst_57 : f32 to vector<8x32xf32>
    %cst_58 = arith.constant dense<0.000000e+00> : vector<8x128xf32>
    %265 = tpu.matmul %47, %260, %cst_58 {dimension_numbers = #tpu.dot_dimension_numbers<[1], [0], [0], [1], [0, 0, 1, 1], [], []>} : vector<8x32xf32>, vector<32x128xf32>, vector<8x128xf32> -> vector<8x128xf32>
    %266 = vector.broadcast %262 : vector<1x128xf32> to vector<8x128xf32>
    %267 = arith.addf %265, %266 : vector<8x128xf32>
    %cst_59 = arith.constant dense<0.000000e+00> : vector<8x128xf32>
    %268 = tpu.matmul %263, %258, %cst_59 {dimension_numbers = #tpu.dot_dimension_numbers<[1], [0], [0], [1], [0, 0, 1, 1], [], []>} : vector<8x32xf32>, vector<32x128xf32>, vector<8x128xf32> -> vector<8x128xf32>
    %269 = arith.addf %267, %268 : vector<8x128xf32>
    %270 = vector.broadcast %8 : vector<1x128xf32> to vector<8x128xf32>
    %271 = arith.mulf %270, %269 : vector<8x128xf32>
    %272 = math.tanh %271 : vector<8x128xf32>
    %273 = vector.broadcast %8 : vector<1x128xf32> to vector<8x128xf32>
    %274 = arith.mulf %273, %272 : vector<8x128xf32>
    %275 = vector.broadcast %11 : vector<1x128xf32> to vector<8x128xf32>
    %276 = arith.addf %274, %275 : vector<8x128xf32>
    %277 = vector.extract_strided_slice %276 {offsets = [0, 0], sizes = [8, 32], strides = [1, 1]} : vector<8x128xf32> to vector<8x32xf32>
    %278 = vector.extract_strided_slice %276 {offsets = [0, 32], sizes = [8, 32], strides = [1, 1]} : vector<8x128xf32> to vector<8x32xf32>
    %279 = vector.extract_strided_slice %276 {offsets = [0, 64], sizes = [8, 32], strides = [1, 1]} : vector<8x128xf32> to vector<8x32xf32>
    %280 = vector.extract_strided_slice %276 {offsets = [0, 96], sizes = [8, 32], strides = [1, 1]} : vector<8x128xf32> to vector<8x32xf32>
    %281 = arith.mulf %278, %264 : vector<8x32xf32>
    %282 = arith.mulf %277, %279 : vector<8x32xf32>
    %283 = arith.addf %281, %282 : vector<8x32xf32>
    %284 = math.tanh %283 : vector<8x32xf32>
    %285 = arith.mulf %280, %284 : vector<8x32xf32>
    %cst_60 = arith.constant dense<0.000000e+00> : vector<8x128xf32>
    %286 = tpu.matmul %66, %260, %cst_60 {dimension_numbers = #tpu.dot_dimension_numbers<[1], [0], [0], [1], [0, 0, 1, 1], [], []>} : vector<8x32xf32>, vector<32x128xf32>, vector<8x128xf32> -> vector<8x128xf32>
    %287 = vector.broadcast %262 : vector<1x128xf32> to vector<8x128xf32>
    %288 = arith.addf %286, %287 : vector<8x128xf32>
    %cst_61 = arith.constant dense<0.000000e+00> : vector<8x128xf32>
    %289 = tpu.matmul %285, %258, %cst_61 {dimension_numbers = #tpu.dot_dimension_numbers<[1], [0], [0], [1], [0, 0, 1, 1], [], []>} : vector<8x32xf32>, vector<32x128xf32>, vector<8x128xf32> -> vector<8x128xf32>
    %290 = arith.addf %288, %289 : vector<8x128xf32>
    %291 = vector.broadcast %8 : vector<1x128xf32> to vector<8x128xf32>
    %292 = arith.mulf %291, %290 : vector<8x128xf32>
    %293 = math.tanh %292 : vector<8x128xf32>
    %294 = vector.broadcast %8 : vector<1x128xf32> to vector<8x128xf32>
    %295 = arith.mulf %294, %293 : vector<8x128xf32>
    %296 = vector.broadcast %11 : vector<1x128xf32> to vector<8x128xf32>
    %297 = arith.addf %295, %296 : vector<8x128xf32>
    %298 = vector.extract_strided_slice %297 {offsets = [0, 0], sizes = [8, 32], strides = [1, 1]} : vector<8x128xf32> to vector<8x32xf32>
    %299 = vector.extract_strided_slice %297 {offsets = [0, 32], sizes = [8, 32], strides = [1, 1]} : vector<8x128xf32> to vector<8x32xf32>
    %300 = vector.extract_strided_slice %297 {offsets = [0, 64], sizes = [8, 32], strides = [1, 1]} : vector<8x128xf32> to vector<8x32xf32>
    %301 = vector.extract_strided_slice %297 {offsets = [0, 96], sizes = [8, 32], strides = [1, 1]} : vector<8x128xf32> to vector<8x32xf32>
    %302 = arith.mulf %299, %283 : vector<8x32xf32>
    %303 = arith.mulf %298, %300 : vector<8x32xf32>
    %304 = arith.addf %302, %303 : vector<8x32xf32>
    %305 = math.tanh %304 : vector<8x32xf32>
    %306 = arith.mulf %301, %305 : vector<8x32xf32>
    %cst_62 = arith.constant dense<0.000000e+00> : vector<8x128xf32>
    %307 = tpu.matmul %85, %260, %cst_62 {dimension_numbers = #tpu.dot_dimension_numbers<[1], [0], [0], [1], [0, 0, 1, 1], [], []>} : vector<8x32xf32>, vector<32x128xf32>, vector<8x128xf32> -> vector<8x128xf32>
    %308 = vector.broadcast %262 : vector<1x128xf32> to vector<8x128xf32>
    %309 = arith.addf %307, %308 : vector<8x128xf32>
    %cst_63 = arith.constant dense<0.000000e+00> : vector<8x128xf32>
    %310 = tpu.matmul %306, %258, %cst_63 {dimension_numbers = #tpu.dot_dimension_numbers<[1], [0], [0], [1], [0, 0, 1, 1], [], []>} : vector<8x32xf32>, vector<32x128xf32>, vector<8x128xf32> -> vector<8x128xf32>
    %311 = arith.addf %309, %310 : vector<8x128xf32>
    %312 = vector.broadcast %8 : vector<1x128xf32> to vector<8x128xf32>
    %313 = arith.mulf %312, %311 : vector<8x128xf32>
    %314 = math.tanh %313 : vector<8x128xf32>
    %315 = vector.broadcast %8 : vector<1x128xf32> to vector<8x128xf32>
    %316 = arith.mulf %315, %314 : vector<8x128xf32>
    %317 = vector.broadcast %11 : vector<1x128xf32> to vector<8x128xf32>
    %318 = arith.addf %316, %317 : vector<8x128xf32>
    %319 = vector.extract_strided_slice %318 {offsets = [0, 0], sizes = [8, 32], strides = [1, 1]} : vector<8x128xf32> to vector<8x32xf32>
    %320 = vector.extract_strided_slice %318 {offsets = [0, 32], sizes = [8, 32], strides = [1, 1]} : vector<8x128xf32> to vector<8x32xf32>
    %321 = vector.extract_strided_slice %318 {offsets = [0, 64], sizes = [8, 32], strides = [1, 1]} : vector<8x128xf32> to vector<8x32xf32>
    %322 = vector.extract_strided_slice %318 {offsets = [0, 96], sizes = [8, 32], strides = [1, 1]} : vector<8x128xf32> to vector<8x32xf32>
    %323 = arith.mulf %320, %304 : vector<8x32xf32>
    %324 = arith.mulf %319, %321 : vector<8x32xf32>
    %325 = arith.addf %323, %324 : vector<8x32xf32>
    %326 = math.tanh %325 : vector<8x32xf32>
    %327 = arith.mulf %322, %326 : vector<8x32xf32>
    %cst_64 = arith.constant dense<0.000000e+00> : vector<8x128xf32>
    %328 = tpu.matmul %104, %260, %cst_64 {dimension_numbers = #tpu.dot_dimension_numbers<[1], [0], [0], [1], [0, 0, 1, 1], [], []>} : vector<8x32xf32>, vector<32x128xf32>, vector<8x128xf32> -> vector<8x128xf32>
    %329 = vector.broadcast %262 : vector<1x128xf32> to vector<8x128xf32>
    %330 = arith.addf %328, %329 : vector<8x128xf32>
    %cst_65 = arith.constant dense<0.000000e+00> : vector<8x128xf32>
    %331 = tpu.matmul %327, %258, %cst_65 {dimension_numbers = #tpu.dot_dimension_numbers<[1], [0], [0], [1], [0, 0, 1, 1], [], []>} : vector<8x32xf32>, vector<32x128xf32>, vector<8x128xf32> -> vector<8x128xf32>
    %332 = arith.addf %330, %331 : vector<8x128xf32>
    %333 = vector.broadcast %8 : vector<1x128xf32> to vector<8x128xf32>
    %334 = arith.mulf %333, %332 : vector<8x128xf32>
    %335 = math.tanh %334 : vector<8x128xf32>
    %336 = vector.broadcast %8 : vector<1x128xf32> to vector<8x128xf32>
    %337 = arith.mulf %336, %335 : vector<8x128xf32>
    %338 = vector.broadcast %11 : vector<1x128xf32> to vector<8x128xf32>
    %339 = arith.addf %337, %338 : vector<8x128xf32>
    %340 = vector.extract_strided_slice %339 {offsets = [0, 0], sizes = [8, 32], strides = [1, 1]} : vector<8x128xf32> to vector<8x32xf32>
    %341 = vector.extract_strided_slice %339 {offsets = [0, 32], sizes = [8, 32], strides = [1, 1]} : vector<8x128xf32> to vector<8x32xf32>
    %342 = vector.extract_strided_slice %339 {offsets = [0, 64], sizes = [8, 32], strides = [1, 1]} : vector<8x128xf32> to vector<8x32xf32>
    %343 = vector.extract_strided_slice %339 {offsets = [0, 96], sizes = [8, 32], strides = [1, 1]} : vector<8x128xf32> to vector<8x32xf32>
    %344 = arith.mulf %341, %325 : vector<8x32xf32>
    %345 = arith.mulf %340, %342 : vector<8x32xf32>
    %346 = arith.addf %344, %345 : vector<8x32xf32>
    %347 = math.tanh %346 : vector<8x32xf32>
    %348 = arith.mulf %343, %347 : vector<8x32xf32>
    %cst_66 = arith.constant dense<0.000000e+00> : vector<8x128xf32>
    %349 = tpu.matmul %123, %260, %cst_66 {dimension_numbers = #tpu.dot_dimension_numbers<[1], [0], [0], [1], [0, 0, 1, 1], [], []>} : vector<8x32xf32>, vector<32x128xf32>, vector<8x128xf32> -> vector<8x128xf32>
    %350 = vector.broadcast %262 : vector<1x128xf32> to vector<8x128xf32>
    %351 = arith.addf %349, %350 : vector<8x128xf32>
    %cst_67 = arith.constant dense<0.000000e+00> : vector<8x128xf32>
    %352 = tpu.matmul %348, %258, %cst_67 {dimension_numbers = #tpu.dot_dimension_numbers<[1], [0], [0], [1], [0, 0, 1, 1], [], []>} : vector<8x32xf32>, vector<32x128xf32>, vector<8x128xf32> -> vector<8x128xf32>
    %353 = arith.addf %351, %352 : vector<8x128xf32>
    %354 = vector.broadcast %8 : vector<1x128xf32> to vector<8x128xf32>
    %355 = arith.mulf %354, %353 : vector<8x128xf32>
    %356 = math.tanh %355 : vector<8x128xf32>
    %357 = vector.broadcast %8 : vector<1x128xf32> to vector<8x128xf32>
    %358 = arith.mulf %357, %356 : vector<8x128xf32>
    %359 = vector.broadcast %11 : vector<1x128xf32> to vector<8x128xf32>
    %360 = arith.addf %358, %359 : vector<8x128xf32>
    %361 = vector.extract_strided_slice %360 {offsets = [0, 0], sizes = [8, 32], strides = [1, 1]} : vector<8x128xf32> to vector<8x32xf32>
    %362 = vector.extract_strided_slice %360 {offsets = [0, 32], sizes = [8, 32], strides = [1, 1]} : vector<8x128xf32> to vector<8x32xf32>
    %363 = vector.extract_strided_slice %360 {offsets = [0, 64], sizes = [8, 32], strides = [1, 1]} : vector<8x128xf32> to vector<8x32xf32>
    %364 = vector.extract_strided_slice %360 {offsets = [0, 96], sizes = [8, 32], strides = [1, 1]} : vector<8x128xf32> to vector<8x32xf32>
    %365 = arith.mulf %362, %346 : vector<8x32xf32>
    %366 = arith.mulf %361, %363 : vector<8x32xf32>
    %367 = arith.addf %365, %366 : vector<8x32xf32>
    %368 = math.tanh %367 : vector<8x32xf32>
    %369 = arith.mulf %364, %368 : vector<8x32xf32>
    %370 = vector.broadcast %13 : vector<1x32xf32> to vector<8x32xf32>
    %371 = arith.mulf %369, %370 : vector<8x32xf32>
    %cst_68 = arith.constant dense<0.000000e+00> : vector<8xf32>
    %372 = vector.multi_reduction <add>, %371, %cst_68 [1] : vector<8x32xf32> to vector<8xf32>
    %373 = vector.shape_cast %372 : vector<8xf32> to vector<8x1xf32>
    %374 = vector.broadcast %14 : vector<1x1xf32> to vector<8x1xf32>
    %375 = arith.addf %373, %374 : vector<8x1xf32>
    %c0_i32 = arith.constant 0 : i32
    %376 = vector.broadcast %c0_i32 : i32 to vector<1x128xi32>
    %377 = arith.cmpi eq, %12, %376 : vector<1x128xi32>
    %378 = arith.extui %377 : vector<1x128xi1> to vector<1x128xi32>
    %379 = arith.sitofp %378 : vector<1x128xi32> to vector<1x128xf32>
    %380 = vector.broadcast %375 : vector<8x1xf32> to vector<8x128xf32>
    %381 = vector.broadcast %379 : vector<1x128xf32> to vector<8x128xf32>
    %382 = arith.mulf %380, %381 : vector<8x128xf32>
    %383 = arith.addf %23, %382 : vector<8x128xf32>
    %384 = arith.addf %24, %375 : vector<8x1xf32>
    %cst_69 = arith.constant dense<0.000000e+00> : vector<8x128xf32>
    %385 = tpu.matmul %142, %260, %cst_69 {dimension_numbers = #tpu.dot_dimension_numbers<[1], [0], [0], [1], [0, 0, 1, 1], [], []>} : vector<8x32xf32>, vector<32x128xf32>, vector<8x128xf32> -> vector<8x128xf32>
    %386 = vector.broadcast %262 : vector<1x128xf32> to vector<8x128xf32>
    %387 = arith.addf %385, %386 : vector<8x128xf32>
    %cst_70 = arith.constant dense<0.000000e+00> : vector<8x128xf32>
    %388 = tpu.matmul %369, %258, %cst_70 {dimension_numbers = #tpu.dot_dimension_numbers<[1], [0], [0], [1], [0, 0, 1, 1], [], []>} : vector<8x32xf32>, vector<32x128xf32>, vector<8x128xf32> -> vector<8x128xf32>
    %389 = arith.addf %387, %388 : vector<8x128xf32>
    %390 = vector.broadcast %8 : vector<1x128xf32> to vector<8x128xf32>
    %391 = arith.mulf %390, %389 : vector<8x128xf32>
    %392 = math.tanh %391 : vector<8x128xf32>
    %393 = vector.broadcast %8 : vector<1x128xf32> to vector<8x128xf32>
    %394 = arith.mulf %393, %392 : vector<8x128xf32>
    %395 = vector.broadcast %11 : vector<1x128xf32> to vector<8x128xf32>
    %396 = arith.addf %394, %395 : vector<8x128xf32>
    %397 = vector.extract_strided_slice %396 {offsets = [0, 0], sizes = [8, 32], strides = [1, 1]} : vector<8x128xf32> to vector<8x32xf32>
    %398 = vector.extract_strided_slice %396 {offsets = [0, 32], sizes = [8, 32], strides = [1, 1]} : vector<8x128xf32> to vector<8x32xf32>
    %399 = vector.extract_strided_slice %396 {offsets = [0, 64], sizes = [8, 32], strides = [1, 1]} : vector<8x128xf32> to vector<8x32xf32>
    %400 = vector.extract_strided_slice %396 {offsets = [0, 96], sizes = [8, 32], strides = [1, 1]} : vector<8x128xf32> to vector<8x32xf32>
    %401 = arith.mulf %398, %367 : vector<8x32xf32>
    %402 = arith.mulf %397, %399 : vector<8x32xf32>
    %403 = arith.addf %401, %402 : vector<8x32xf32>
    %404 = math.tanh %403 : vector<8x32xf32>
    %405 = arith.mulf %400, %404 : vector<8x32xf32>
    %406 = vector.broadcast %13 : vector<1x32xf32> to vector<8x32xf32>
    %407 = arith.mulf %405, %406 : vector<8x32xf32>
    %cst_71 = arith.constant dense<0.000000e+00> : vector<8xf32>
    %408 = vector.multi_reduction <add>, %407, %cst_71 [1] : vector<8x32xf32> to vector<8xf32>
    %409 = vector.shape_cast %408 : vector<8xf32> to vector<8x1xf32>
    %410 = vector.broadcast %14 : vector<1x1xf32> to vector<8x1xf32>
    %411 = arith.addf %409, %410 : vector<8x1xf32>
    %c1_i32 = arith.constant 1 : i32
    %412 = vector.broadcast %c1_i32 : i32 to vector<1x128xi32>
    %413 = arith.cmpi eq, %12, %412 : vector<1x128xi32>
    %414 = arith.extui %413 : vector<1x128xi1> to vector<1x128xi32>
    %415 = arith.sitofp %414 : vector<1x128xi32> to vector<1x128xf32>
    %416 = vector.broadcast %411 : vector<8x1xf32> to vector<8x128xf32>
    %417 = vector.broadcast %415 : vector<1x128xf32> to vector<8x128xf32>
    %418 = arith.mulf %416, %417 : vector<8x128xf32>
    %419 = arith.addf %383, %418 : vector<8x128xf32>
    %420 = arith.addf %384, %411 : vector<8x1xf32>
    %cst_72 = arith.constant dense<0.000000e+00> : vector<8x128xf32>
    %421 = tpu.matmul %161, %260, %cst_72 {dimension_numbers = #tpu.dot_dimension_numbers<[1], [0], [0], [1], [0, 0, 1, 1], [], []>} : vector<8x32xf32>, vector<32x128xf32>, vector<8x128xf32> -> vector<8x128xf32>
    %422 = vector.broadcast %262 : vector<1x128xf32> to vector<8x128xf32>
    %423 = arith.addf %421, %422 : vector<8x128xf32>
    %cst_73 = arith.constant dense<0.000000e+00> : vector<8x128xf32>
    %424 = tpu.matmul %405, %258, %cst_73 {dimension_numbers = #tpu.dot_dimension_numbers<[1], [0], [0], [1], [0, 0, 1, 1], [], []>} : vector<8x32xf32>, vector<32x128xf32>, vector<8x128xf32> -> vector<8x128xf32>
    %425 = arith.addf %423, %424 : vector<8x128xf32>
    %426 = vector.broadcast %8 : vector<1x128xf32> to vector<8x128xf32>
    %427 = arith.mulf %426, %425 : vector<8x128xf32>
    %428 = math.tanh %427 : vector<8x128xf32>
    %429 = vector.broadcast %8 : vector<1x128xf32> to vector<8x128xf32>
    %430 = arith.mulf %429, %428 : vector<8x128xf32>
    %431 = vector.broadcast %11 : vector<1x128xf32> to vector<8x128xf32>
    %432 = arith.addf %430, %431 : vector<8x128xf32>
    %433 = vector.extract_strided_slice %432 {offsets = [0, 0], sizes = [8, 32], strides = [1, 1]} : vector<8x128xf32> to vector<8x32xf32>
    %434 = vector.extract_strided_slice %432 {offsets = [0, 32], sizes = [8, 32], strides = [1, 1]} : vector<8x128xf32> to vector<8x32xf32>
    %435 = vector.extract_strided_slice %432 {offsets = [0, 64], sizes = [8, 32], strides = [1, 1]} : vector<8x128xf32> to vector<8x32xf32>
    %436 = vector.extract_strided_slice %432 {offsets = [0, 96], sizes = [8, 32], strides = [1, 1]} : vector<8x128xf32> to vector<8x32xf32>
    %437 = arith.mulf %434, %403 : vector<8x32xf32>
    %438 = arith.mulf %433, %435 : vector<8x32xf32>
    %439 = arith.addf %437, %438 : vector<8x32xf32>
    %440 = math.tanh %439 : vector<8x32xf32>
    %441 = arith.mulf %436, %440 : vector<8x32xf32>
    %442 = vector.broadcast %13 : vector<1x32xf32> to vector<8x32xf32>
    %443 = arith.mulf %441, %442 : vector<8x32xf32>
    %cst_74 = arith.constant dense<0.000000e+00> : vector<8xf32>
    %444 = vector.multi_reduction <add>, %443, %cst_74 [1] : vector<8x32xf32> to vector<8xf32>
    %445 = vector.shape_cast %444 : vector<8xf32> to vector<8x1xf32>
    %446 = vector.broadcast %14 : vector<1x1xf32> to vector<8x1xf32>
    %447 = arith.addf %445, %446 : vector<8x1xf32>
    %c2_i32 = arith.constant 2 : i32
    %448 = vector.broadcast %c2_i32 : i32 to vector<1x128xi32>
    %449 = arith.cmpi eq, %12, %448 : vector<1x128xi32>
    %450 = arith.extui %449 : vector<1x128xi1> to vector<1x128xi32>
    %451 = arith.sitofp %450 : vector<1x128xi32> to vector<1x128xf32>
    %452 = vector.broadcast %447 : vector<8x1xf32> to vector<8x128xf32>
    %453 = vector.broadcast %451 : vector<1x128xf32> to vector<8x128xf32>
    %454 = arith.mulf %452, %453 : vector<8x128xf32>
    %455 = arith.addf %419, %454 : vector<8x128xf32>
    %456 = arith.addf %420, %447 : vector<8x1xf32>
    %cst_75 = arith.constant dense<0.000000e+00> : vector<8x128xf32>
    %457 = tpu.matmul %180, %260, %cst_75 {dimension_numbers = #tpu.dot_dimension_numbers<[1], [0], [0], [1], [0, 0, 1, 1], [], []>} : vector<8x32xf32>, vector<32x128xf32>, vector<8x128xf32> -> vector<8x128xf32>
    %458 = vector.broadcast %262 : vector<1x128xf32> to vector<8x128xf32>
    %459 = arith.addf %457, %458 : vector<8x128xf32>
    %cst_76 = arith.constant dense<0.000000e+00> : vector<8x128xf32>
    %460 = tpu.matmul %441, %258, %cst_76 {dimension_numbers = #tpu.dot_dimension_numbers<[1], [0], [0], [1], [0, 0, 1, 1], [], []>} : vector<8x32xf32>, vector<32x128xf32>, vector<8x128xf32> -> vector<8x128xf32>
    %461 = arith.addf %459, %460 : vector<8x128xf32>
    %462 = vector.broadcast %8 : vector<1x128xf32> to vector<8x128xf32>
    %463 = arith.mulf %462, %461 : vector<8x128xf32>
    %464 = math.tanh %463 : vector<8x128xf32>
    %465 = vector.broadcast %8 : vector<1x128xf32> to vector<8x128xf32>
    %466 = arith.mulf %465, %464 : vector<8x128xf32>
    %467 = vector.broadcast %11 : vector<1x128xf32> to vector<8x128xf32>
    %468 = arith.addf %466, %467 : vector<8x128xf32>
    %469 = vector.extract_strided_slice %468 {offsets = [0, 0], sizes = [8, 32], strides = [1, 1]} : vector<8x128xf32> to vector<8x32xf32>
    %470 = vector.extract_strided_slice %468 {offsets = [0, 32], sizes = [8, 32], strides = [1, 1]} : vector<8x128xf32> to vector<8x32xf32>
    %471 = vector.extract_strided_slice %468 {offsets = [0, 64], sizes = [8, 32], strides = [1, 1]} : vector<8x128xf32> to vector<8x32xf32>
    %472 = vector.extract_strided_slice %468 {offsets = [0, 96], sizes = [8, 32], strides = [1, 1]} : vector<8x128xf32> to vector<8x32xf32>
    %473 = arith.mulf %470, %439 : vector<8x32xf32>
    %474 = arith.mulf %469, %471 : vector<8x32xf32>
    %475 = arith.addf %473, %474 : vector<8x32xf32>
    %476 = math.tanh %475 : vector<8x32xf32>
    %477 = arith.mulf %472, %476 : vector<8x32xf32>
    %478 = vector.broadcast %13 : vector<1x32xf32> to vector<8x32xf32>
    %479 = arith.mulf %477, %478 : vector<8x32xf32>
    %cst_77 = arith.constant dense<0.000000e+00> : vector<8xf32>
    %480 = vector.multi_reduction <add>, %479, %cst_77 [1] : vector<8x32xf32> to vector<8xf32>
    %481 = vector.shape_cast %480 : vector<8xf32> to vector<8x1xf32>
    %482 = vector.broadcast %14 : vector<1x1xf32> to vector<8x1xf32>
    %483 = arith.addf %481, %482 : vector<8x1xf32>
    %c3_i32 = arith.constant 3 : i32
    %484 = vector.broadcast %c3_i32 : i32 to vector<1x128xi32>
    %485 = arith.cmpi eq, %12, %484 : vector<1x128xi32>
    %486 = arith.extui %485 : vector<1x128xi1> to vector<1x128xi32>
    %487 = arith.sitofp %486 : vector<1x128xi32> to vector<1x128xf32>
    %488 = vector.broadcast %483 : vector<8x1xf32> to vector<8x128xf32>
    %489 = vector.broadcast %487 : vector<1x128xf32> to vector<8x128xf32>
    %490 = arith.mulf %488, %489 : vector<8x128xf32>
    %491 = arith.addf %455, %490 : vector<8x128xf32>
    %492 = arith.addf %456, %483 : vector<8x1xf32>
    %cst_78 = arith.constant dense<0.000000e+00> : vector<8x128xf32>
    %493 = tpu.matmul %199, %260, %cst_78 {dimension_numbers = #tpu.dot_dimension_numbers<[1], [0], [0], [1], [0, 0, 1, 1], [], []>} : vector<8x32xf32>, vector<32x128xf32>, vector<8x128xf32> -> vector<8x128xf32>
    %494 = vector.broadcast %262 : vector<1x128xf32> to vector<8x128xf32>
    %495 = arith.addf %493, %494 : vector<8x128xf32>
    %cst_79 = arith.constant dense<0.000000e+00> : vector<8x128xf32>
    %496 = tpu.matmul %477, %258, %cst_79 {dimension_numbers = #tpu.dot_dimension_numbers<[1], [0], [0], [1], [0, 0, 1, 1], [], []>} : vector<8x32xf32>, vector<32x128xf32>, vector<8x128xf32> -> vector<8x128xf32>
    %497 = arith.addf %495, %496 : vector<8x128xf32>
    %498 = vector.broadcast %8 : vector<1x128xf32> to vector<8x128xf32>
    %499 = arith.mulf %498, %497 : vector<8x128xf32>
    %500 = math.tanh %499 : vector<8x128xf32>
    %501 = vector.broadcast %8 : vector<1x128xf32> to vector<8x128xf32>
    %502 = arith.mulf %501, %500 : vector<8x128xf32>
    %503 = vector.broadcast %11 : vector<1x128xf32> to vector<8x128xf32>
    %504 = arith.addf %502, %503 : vector<8x128xf32>
    %505 = vector.extract_strided_slice %504 {offsets = [0, 0], sizes = [8, 32], strides = [1, 1]} : vector<8x128xf32> to vector<8x32xf32>
    %506 = vector.extract_strided_slice %504 {offsets = [0, 32], sizes = [8, 32], strides = [1, 1]} : vector<8x128xf32> to vector<8x32xf32>
    %507 = vector.extract_strided_slice %504 {offsets = [0, 64], sizes = [8, 32], strides = [1, 1]} : vector<8x128xf32> to vector<8x32xf32>
    %508 = vector.extract_strided_slice %504 {offsets = [0, 96], sizes = [8, 32], strides = [1, 1]} : vector<8x128xf32> to vector<8x32xf32>
    %509 = arith.mulf %506, %475 : vector<8x32xf32>
    %510 = arith.mulf %505, %507 : vector<8x32xf32>
    %511 = arith.addf %509, %510 : vector<8x32xf32>
    %512 = math.tanh %511 : vector<8x32xf32>
    %513 = arith.mulf %508, %512 : vector<8x32xf32>
    %514 = vector.broadcast %13 : vector<1x32xf32> to vector<8x32xf32>
    %515 = arith.mulf %513, %514 : vector<8x32xf32>
    %cst_80 = arith.constant dense<0.000000e+00> : vector<8xf32>
    %516 = vector.multi_reduction <add>, %515, %cst_80 [1] : vector<8x32xf32> to vector<8xf32>
    %517 = vector.shape_cast %516 : vector<8xf32> to vector<8x1xf32>
    %518 = vector.broadcast %14 : vector<1x1xf32> to vector<8x1xf32>
    %519 = arith.addf %517, %518 : vector<8x1xf32>
    %c4_i32 = arith.constant 4 : i32
    %520 = vector.broadcast %c4_i32 : i32 to vector<1x128xi32>
    %521 = arith.cmpi eq, %12, %520 : vector<1x128xi32>
    %522 = arith.extui %521 : vector<1x128xi1> to vector<1x128xi32>
    %523 = arith.sitofp %522 : vector<1x128xi32> to vector<1x128xf32>
    %524 = vector.broadcast %519 : vector<8x1xf32> to vector<8x128xf32>
    %525 = vector.broadcast %523 : vector<1x128xf32> to vector<8x128xf32>
    %526 = arith.mulf %524, %525 : vector<8x128xf32>
    %527 = arith.addf %491, %526 : vector<8x128xf32>
    %528 = arith.addf %492, %519 : vector<8x1xf32>
    %cst_81 = arith.constant dense<0.000000e+00> : vector<8x128xf32>
    %529 = tpu.matmul %218, %260, %cst_81 {dimension_numbers = #tpu.dot_dimension_numbers<[1], [0], [0], [1], [0, 0, 1, 1], [], []>} : vector<8x32xf32>, vector<32x128xf32>, vector<8x128xf32> -> vector<8x128xf32>
    %530 = vector.broadcast %262 : vector<1x128xf32> to vector<8x128xf32>
    %531 = arith.addf %529, %530 : vector<8x128xf32>
    %cst_82 = arith.constant dense<0.000000e+00> : vector<8x128xf32>
    %532 = tpu.matmul %513, %258, %cst_82 {dimension_numbers = #tpu.dot_dimension_numbers<[1], [0], [0], [1], [0, 0, 1, 1], [], []>} : vector<8x32xf32>, vector<32x128xf32>, vector<8x128xf32> -> vector<8x128xf32>
    %533 = arith.addf %531, %532 : vector<8x128xf32>
    %534 = vector.broadcast %8 : vector<1x128xf32> to vector<8x128xf32>
    %535 = arith.mulf %534, %533 : vector<8x128xf32>
    %536 = math.tanh %535 : vector<8x128xf32>
    %537 = vector.broadcast %8 : vector<1x128xf32> to vector<8x128xf32>
    %538 = arith.mulf %537, %536 : vector<8x128xf32>
    %539 = vector.broadcast %11 : vector<1x128xf32> to vector<8x128xf32>
    %540 = arith.addf %538, %539 : vector<8x128xf32>
    %541 = vector.extract_strided_slice %540 {offsets = [0, 0], sizes = [8, 32], strides = [1, 1]} : vector<8x128xf32> to vector<8x32xf32>
    %542 = vector.extract_strided_slice %540 {offsets = [0, 32], sizes = [8, 32], strides = [1, 1]} : vector<8x128xf32> to vector<8x32xf32>
    %543 = vector.extract_strided_slice %540 {offsets = [0, 64], sizes = [8, 32], strides = [1, 1]} : vector<8x128xf32> to vector<8x32xf32>
    %544 = vector.extract_strided_slice %540 {offsets = [0, 96], sizes = [8, 32], strides = [1, 1]} : vector<8x128xf32> to vector<8x32xf32>
    %545 = arith.mulf %542, %511 : vector<8x32xf32>
    %546 = arith.mulf %541, %543 : vector<8x32xf32>
    %547 = arith.addf %545, %546 : vector<8x32xf32>
    %548 = math.tanh %547 : vector<8x32xf32>
    %549 = arith.mulf %544, %548 : vector<8x32xf32>
    %550 = vector.broadcast %13 : vector<1x32xf32> to vector<8x32xf32>
    %551 = arith.mulf %549, %550 : vector<8x32xf32>
    %cst_83 = arith.constant dense<0.000000e+00> : vector<8xf32>
    %552 = vector.multi_reduction <add>, %551, %cst_83 [1] : vector<8x32xf32> to vector<8xf32>
    %553 = vector.shape_cast %552 : vector<8xf32> to vector<8x1xf32>
    %554 = vector.broadcast %14 : vector<1x1xf32> to vector<8x1xf32>
    %555 = arith.addf %553, %554 : vector<8x1xf32>
    %c5_i32 = arith.constant 5 : i32
    %556 = vector.broadcast %c5_i32 : i32 to vector<1x128xi32>
    %557 = arith.cmpi eq, %12, %556 : vector<1x128xi32>
    %558 = arith.extui %557 : vector<1x128xi1> to vector<1x128xi32>
    %559 = arith.sitofp %558 : vector<1x128xi32> to vector<1x128xf32>
    %560 = vector.broadcast %555 : vector<8x1xf32> to vector<8x128xf32>
    %561 = vector.broadcast %559 : vector<1x128xf32> to vector<8x128xf32>
    %562 = arith.mulf %560, %561 : vector<8x128xf32>
    %563 = arith.addf %527, %562 : vector<8x128xf32>
    %564 = arith.addf %528, %555 : vector<8x1xf32>
    %cst_84 = arith.constant dense<0.000000e+00> : vector<8x128xf32>
    %565 = tpu.matmul %237, %260, %cst_84 {dimension_numbers = #tpu.dot_dimension_numbers<[1], [0], [0], [1], [0, 0, 1, 1], [], []>} : vector<8x32xf32>, vector<32x128xf32>, vector<8x128xf32> -> vector<8x128xf32>
    %566 = vector.broadcast %262 : vector<1x128xf32> to vector<8x128xf32>
    %567 = arith.addf %565, %566 : vector<8x128xf32>
    %cst_85 = arith.constant dense<0.000000e+00> : vector<8x128xf32>
    %568 = tpu.matmul %549, %258, %cst_85 {dimension_numbers = #tpu.dot_dimension_numbers<[1], [0], [0], [1], [0, 0, 1, 1], [], []>} : vector<8x32xf32>, vector<32x128xf32>, vector<8x128xf32> -> vector<8x128xf32>
    %569 = arith.addf %567, %568 : vector<8x128xf32>
    %570 = vector.broadcast %8 : vector<1x128xf32> to vector<8x128xf32>
    %571 = arith.mulf %570, %569 : vector<8x128xf32>
    %572 = math.tanh %571 : vector<8x128xf32>
    %573 = vector.broadcast %8 : vector<1x128xf32> to vector<8x128xf32>
    %574 = arith.mulf %573, %572 : vector<8x128xf32>
    %575 = vector.broadcast %11 : vector<1x128xf32> to vector<8x128xf32>
    %576 = arith.addf %574, %575 : vector<8x128xf32>
    %577 = vector.extract_strided_slice %576 {offsets = [0, 0], sizes = [8, 32], strides = [1, 1]} : vector<8x128xf32> to vector<8x32xf32>
    %578 = vector.extract_strided_slice %576 {offsets = [0, 32], sizes = [8, 32], strides = [1, 1]} : vector<8x128xf32> to vector<8x32xf32>
    %579 = vector.extract_strided_slice %576 {offsets = [0, 64], sizes = [8, 32], strides = [1, 1]} : vector<8x128xf32> to vector<8x32xf32>
    %580 = vector.extract_strided_slice %576 {offsets = [0, 96], sizes = [8, 32], strides = [1, 1]} : vector<8x128xf32> to vector<8x32xf32>
    %581 = arith.mulf %578, %547 : vector<8x32xf32>
    %582 = arith.mulf %577, %579 : vector<8x32xf32>
    %583 = arith.addf %581, %582 : vector<8x32xf32>
    %584 = math.tanh %583 : vector<8x32xf32>
    %585 = arith.mulf %580, %584 : vector<8x32xf32>
    %586 = vector.broadcast %13 : vector<1x32xf32> to vector<8x32xf32>
    %587 = arith.mulf %585, %586 : vector<8x32xf32>
    %cst_86 = arith.constant dense<0.000000e+00> : vector<8xf32>
    %588 = vector.multi_reduction <add>, %587, %cst_86 [1] : vector<8x32xf32> to vector<8xf32>
    %589 = vector.shape_cast %588 : vector<8xf32> to vector<8x1xf32>
    %590 = vector.broadcast %14 : vector<1x1xf32> to vector<8x1xf32>
    %591 = arith.addf %589, %590 : vector<8x1xf32>
    %c6_i32 = arith.constant 6 : i32
    %592 = vector.broadcast %c6_i32 : i32 to vector<1x128xi32>
    %593 = arith.cmpi eq, %12, %592 : vector<1x128xi32>
    %594 = arith.extui %593 : vector<1x128xi1> to vector<1x128xi32>
    %595 = arith.sitofp %594 : vector<1x128xi32> to vector<1x128xf32>
    %596 = vector.broadcast %591 : vector<8x1xf32> to vector<8x128xf32>
    %597 = vector.broadcast %595 : vector<1x128xf32> to vector<8x128xf32>
    %598 = arith.mulf %596, %597 : vector<8x128xf32>
    %599 = arith.addf %563, %598 : vector<8x128xf32>
    %600 = arith.addf %564, %591 : vector<8x1xf32>
    %cst_87 = arith.constant dense<0.000000e+00> : vector<8x128xf32>
    %601 = tpu.matmul %256, %260, %cst_87 {dimension_numbers = #tpu.dot_dimension_numbers<[1], [0], [0], [1], [0, 0, 1, 1], [], []>} : vector<8x32xf32>, vector<32x128xf32>, vector<8x128xf32> -> vector<8x128xf32>
    %602 = vector.broadcast %262 : vector<1x128xf32> to vector<8x128xf32>
    %603 = arith.addf %601, %602 : vector<8x128xf32>
    %cst_88 = arith.constant dense<0.000000e+00> : vector<8x128xf32>
    %604 = tpu.matmul %585, %258, %cst_88 {dimension_numbers = #tpu.dot_dimension_numbers<[1], [0], [0], [1], [0, 0, 1, 1], [], []>} : vector<8x32xf32>, vector<32x128xf32>, vector<8x128xf32> -> vector<8x128xf32>
    %605 = arith.addf %603, %604 : vector<8x128xf32>
    %606 = vector.broadcast %8 : vector<1x128xf32> to vector<8x128xf32>
    %607 = arith.mulf %606, %605 : vector<8x128xf32>
    %608 = math.tanh %607 : vector<8x128xf32>
    %609 = vector.broadcast %8 : vector<1x128xf32> to vector<8x128xf32>
    %610 = arith.mulf %609, %608 : vector<8x128xf32>
    %611 = vector.broadcast %11 : vector<1x128xf32> to vector<8x128xf32>
    %612 = arith.addf %610, %611 : vector<8x128xf32>
    %613 = vector.extract_strided_slice %612 {offsets = [0, 0], sizes = [8, 32], strides = [1, 1]} : vector<8x128xf32> to vector<8x32xf32>
    %614 = vector.extract_strided_slice %612 {offsets = [0, 32], sizes = [8, 32], strides = [1, 1]} : vector<8x128xf32> to vector<8x32xf32>
    %615 = vector.extract_strided_slice %612 {offsets = [0, 64], sizes = [8, 32], strides = [1, 1]} : vector<8x128xf32> to vector<8x32xf32>
    %616 = vector.extract_strided_slice %612 {offsets = [0, 96], sizes = [8, 32], strides = [1, 1]} : vector<8x128xf32> to vector<8x32xf32>
    %617 = arith.mulf %614, %583 : vector<8x32xf32>
    %618 = arith.mulf %613, %615 : vector<8x32xf32>
    %619 = arith.addf %617, %618 : vector<8x32xf32>
    %620 = math.tanh %619 : vector<8x32xf32>
    %621 = arith.mulf %616, %620 : vector<8x32xf32>
    %622 = vector.broadcast %13 : vector<1x32xf32> to vector<8x32xf32>
    %623 = arith.mulf %621, %622 : vector<8x32xf32>
    %cst_89 = arith.constant dense<0.000000e+00> : vector<8xf32>
    %624 = vector.multi_reduction <add>, %623, %cst_89 [1] : vector<8x32xf32> to vector<8xf32>
    %625 = vector.shape_cast %624 : vector<8xf32> to vector<8x1xf32>
    %626 = vector.broadcast %14 : vector<1x1xf32> to vector<8x1xf32>
    %627 = arith.addf %625, %626 : vector<8x1xf32>
    %c7_i32 = arith.constant 7 : i32
    %628 = vector.broadcast %c7_i32 : i32 to vector<1x128xi32>
    %629 = arith.cmpi eq, %12, %628 : vector<1x128xi32>
    %630 = arith.extui %629 : vector<1x128xi1> to vector<1x128xi32>
    %631 = arith.sitofp %630 : vector<1x128xi32> to vector<1x128xf32>
    %632 = vector.broadcast %627 : vector<8x1xf32> to vector<8x128xf32>
    %633 = vector.broadcast %631 : vector<1x128xf32> to vector<8x128xf32>
    %634 = arith.mulf %632, %633 : vector<8x128xf32>
    %635 = arith.addf %599, %634 : vector<8x128xf32>
    %636 = arith.addf %600, %627 : vector<8x1xf32>
    %cst_90 = arith.constant 1.250000e-01 : f32
    %637 = vector.broadcast %cst_90 : f32 to vector<8x1xf32>
    %638 = arith.mulf %636, %637 : vector<8x1xf32>
    %c8_i32 = arith.constant 8 : i32
    %639 = vector.broadcast %c8_i32 : i32 to vector<1x128xi32>
    %640 = arith.cmpi eq, %12, %639 : vector<1x128xi32>
    %641 = arith.extui %640 : vector<1x128xi1> to vector<1x128xi32>
    %642 = arith.sitofp %641 : vector<1x128xi32> to vector<1x128xf32>
    %643 = vector.broadcast %638 : vector<8x1xf32> to vector<8x128xf32>
    %644 = vector.broadcast %642 : vector<1x128xf32> to vector<8x128xf32>
    %645 = arith.mulf %643, %644 : vector<8x128xf32>
    %646 = arith.addf %635, %645 : vector<8x128xf32>
    %c0_91 = arith.constant 0 : index
    %c0_92 = arith.constant 0 : index
    %647 = vector.load %arg7[%c0_91, %c0_92] : memref<8x128xf32, #tpu.memory_space<vmem>>, vector<8x128xf32>
    tpu.vector_store %arg7[%c0_91, %c0_92], %646 {strides = array<i32>} : memref<8x128xf32, #tpu.memory_space<vmem>>, vector<8x128xf32>,
    return
  }
}

</mosaic_0001>

<bundles_post_ra>
// kernel: vcm_forward.1
= control target key start
LH: loop header
LB: loop body
LE: loop exit
PB: predicated region body
PF: predicated region fallthrough
CT: control target
= control target key end

     0   :  { %vm58_vm0 = vcmask 130048   ;;  %v4660_v0 = vmov 0.0|0.0   ;;  %vm4661_vm1 = vmmov 0   ;;  %v4662_v4 = vmov 0.0   ;;  %s4664_s18 = smov 64   ;;  %s4665_s19 = smov 32   ;;  %s5417_s1 = inlined_call_operand.vmem [shape: f32[16,128], index: 1, kind: input, shape index: {}]   ;;  %s5418_s3 = inlined_call_operand.vmem [shape: f32[2,32,128], index: 3, kind: input, shape index: {}]   ;;  %s5419_s0 = inlined_call_operand.vmem [shape: f32[96,16], index: 0, kind: input, shape index: {}]   ;;  %s5420_s4 = inlined_call_operand.vmem [shape: f32[2,1,128], index: 4, kind: input, shape index: {}]   ;;  %s5421_s2 = inlined_call_operand.vmem [shape: f32[1,32,128], index: 2, kind: input, shape index: {}]   ;;  %s5422_s5 = inlined_call_operand.vmem [shape: f32[1,32], index: 5, kind: input, shape index: {}]   ;;  %s5423_s6 = inlined_call_operand.<no memory space> [shape: f32[1,1], index: 6, kind: input, shape index: {}]   ;;  %s5424_s7 = inlined_call_operand.vmem [shape: f32[8,128], index: 7, kind: output, shape index: {}]  }
   0x1   :  { %4302 = vmatprep.subr.bf16.mxu1 %v4660_v0  ;;  %v49_v1 = vld [vmem:[%s5417_s1] sm:$0xff]  ;;  %v50_v2 = vld [vmem:[%s5417_s1 + $0x8] sm:$0xff]  ;;  %3910 = vmatprep.mubr.msk.f32.mxu1 %vm4661_vm1, %v4662_v4  ;;  %v234_v9 = vld [vmem:[%s5418_s3 + $0x10] sm:$0xff]  ;;  %v28_v13 = vlaneseq  ;;  %v4663_v19 = vmov 0.5   ;;  %vm237_vm5 = vcmask 261120   ;;  %s4666_s1 = smov 96  }
   0x2   :  { %v232_v3 = vld [vmem:[%s5418_s3] sm:$0xff]  ;;  %v4298_v5 = vpack.c.bf16 %v50_v2, %v49_v1  ;;  %v233_v6 = vld [vmem:[%s5418_s3 + $0x8] sm:$0xff]  ;;  %v235_v10 = vld [vmem:[%s5418_s3 + $0x18] sm:$0xff] }
   0x3   :  { %v37_v7 = vld [vmem:[%s5419_s0] sm:$0xff]  ;;  %v4726_v8 = vpack.c.bf16 %v233_v6, %v232_v3  ;;  %v38_v11 = vld [vmem:[%s5419_s0 + $0x8] sm:$0xff]  ;;  %v4739_v12 = vpack.c.bf16 %v235_v10, %v234_v9  ;;  %v4757_v14 = vand.u32 127, %v28_v13  ;;  %v39_v51 = vld [vmem:[%s5419_s0 + $0x10] sm:$0xff] }
   0x4   :  { %3884 = vmatprep.mubr.msk.f32.mxu0 %vm58_vm0, %v37_v7  ;;  %4299 = vmatprep.subr.bf16.mxu0 %v4298_v5  ;;  %v4764_v15 = vld [vmem:[%s5420_s4] ss:$0 sm:$0xff]  ;;  %v40_v52 = vld [vmem:[%s5419_s0 + $0x18] sm:$0xff]  ;;  %v42_v13 = vld [vmem:[%s5419_s0 + $0x28] sm:$0xff] }
   0x5   :  { %4304 = vmatpush3.bf16.msra.mxu1 %v4726_v8  ;;  %4301 = vmatpush3.bf16.msra.mxu0 %v4298_v5  ;;  %vm30_vm2 = vcmp.ge.s32.totalorder %v4757_v14, 64  ;;  %vm31_vm3 = vcmp.lt.s32.totalorder %v4757_v14, 96  ;;  %vm2468_vm6 = vcmp.eq.s32.totalorder %v4757_v14, 1  ;;  %vm2281_vm7 = vcmp.eq.s32.totalorder %v4757_v14, 0 }
   0x6   :  { %4305 = vmatprep.subr.bf16.mxu1 %v4660_v0  ;;  %4320 = vmatprep.subr.bf16.mxu0 %v4660_v0  ;;  %vm32_vm4 = vmand %vm30_vm2, %vm31_vm3  ;;  %vm2655_vm8 = vcmp.eq.s32.totalorder %v4757_v14, 2  ;;  %vm2842_vm9 = vcmp.eq.s32.totalorder %v4757_v14, 3  ;;  %vm3029_vm10 = vcmp.eq.s32.totalorder %v4757_v14, 4  ;;  %vm3216_vm11 = vcmp.eq.s32.totalorder %v4757_v14, 5 }
   0x7   :  { %v4767_v20 = vsel %vm32_vm4, 1.0, %v4663_v19  ;;  %v4770_v26 = vsel %vm32_vm4, 0.0, %v4663_v19  ;;  %v46_v19 = vld [vmem:[%s5419_s0 + $0x48] sm:$0xff]  ;;  %vm3403_vm12 = vcmp.eq.s32.totalorder %v4757_v14, 6  ;;  %vm3595_vm13 = vcmp.eq.s32.totalorder %v4757_v14, 7 }
   0x8   :  { %3885 = vmatmul.mubr.msk.f32.vlgmr.msra.gmra.mrb[0].mxu0 %vm58_vm0, %v38_v11  ;;  %v41_v11 = vld [vmem:[%s5419_s0 + $0x20] sm:$0xff]  ;;  %vm3607_vm14 = vcmp.eq.s32.totalorder %v4757_v14, 8 }
   0x9   :  { %4307 = vmatpush3.bf16.msra.mxu1 %v4739_v12  ;;  %4322 = vmatpush3.bf16.msra.mxu0 %v4726_v8 }
   0xa   :  { %4308 = vmatprep.subr.bf16.mxu1 %v4660_v0  ;;  %4323 = vmatprep.subr.bf16.mxu0 %v4660_v0 }
   0xb   :  { %3887 = vmatprep.mubr.msk.f32.mxu0 %vm58_vm0, %v39_v51 }
   0xc   :  { %3911 = vmatmul.mubr.f32.vlgmr.msra.gmra.mrb[0].mxu1 %v4662_v4  ;;  %3888 = vmatmul.mubr.msk.f32.gmra.mrb[2].mxu0 %vm58_vm0, %v40_v52 }
   0xd   :  { %4310 = vmatpush3.bf16.msra.mxu1 %v4726_v8  ;;  %3921 = vmatprep.mubr.msk.f32.mxu1 %vm4661_vm1, %v4662_v4 }
   0xe   :  { %4311 = vmatprep.subr.bf16.mxu1 %v4660_v0  ;;  %4325 = vmatpush3.bf16.msra.mxu0 %v4739_v12 }
   0xf   :  { %4332 = vmatprep.subr.bf16.mxu0 %v4660_v0  ;;  %3890 = vmatprep.mubr.msk.f32.mxu0 %vm58_vm0, %v41_v11 }
  0x10   :  { %3891 = vmatmul.mubr.msk.f32.gmra.mrb[4].mxu0 %vm58_vm0, %v42_v13 }
  0x11   :  { %4313 = vmatpush3.bf16.msra.mxu1 %v4739_v12 }
  0x12   :  { %4314 = vmatprep.subr.bf16.mxu1 %v4660_v0 }
  0xdb   :  { %v3886_v16 = vpop.f32.mrb[0].mxu0 }
  0xdc   :  { %v161_v17 = vpop.f32.mrb[1].mxu0  ;;  %v167_v38 = vadd.f32 %v3886_v16, %v4764_v15  ;;  %v43_v16 = vld [vmem:[%s5419_s0 + $0x30] sm:$0xff] }
  0xdd   :  { %v162_v18 = vadd.f32 %v4764_v15, %v161_v17  ;;  %3893 = vmatprep.mubr.msk.f32.mxu0 %vm58_vm0, %v43_v16  ;;  %v44_v17 = vld [vmem:[%s5419_s0 + $0x38] sm:$0xff] }
  0xde   :  { %3894 = vmatmul.mubr.msk.f32.gmra.mrb[6].mxu0 %vm58_vm0, %v44_v17 }
  0xdf   :  { %v307_v21 = vpop.f32.mrb[0].mxu1  ;;  %v4804_v56 = vpop.f32.mrb[2].mxu0 }
  0xe0   :  { %v311_v22 = vadd.f32 %v307_v21, %v162_v18  ;;  %v3912_v23 = vpop.f32.mrb[1].mxu1  ;;  %v171_v57 = vpop.f32.mrb[3].mxu0  ;;  %v45_v18 = vld [vmem:[%s5419_s0 + $0x40] sm:$0xff]  ;;  %v47_v21 = vld [vmem:[%s5419_s0 + $0x50] sm:$0xff] }
  0xe1   :  { %v172_v59 = vadd.f32 %v4764_v15, %v171_v57  ;;  %3896 = vmatprep.mubr.msk.f32.mxu0 %vm58_vm0, %v45_v18  ;;  %v48_v23 = vld [vmem:[%s5419_s0 + $0x58] sm:$0xff] }
  0xe2   :  { %v312_v24 = vmul.f32 %v311_v22, %v4767_v20  ;;  %3897 = vmatmul.mubr.msk.f32.gmra.mrb[8].mxu0 %vm58_vm0, %v46_v19 }
  0xe3   :  { %3899 = vmatprep.mubr.msk.f32.mxu0 %vm58_vm0, %v47_v21 }
  0xe4   :  { %4564 = vtanh.f32 %v312_v24 }
  0xe6   :  { %3900 = vmatmul.mubr.msk.f32.gmra.mrb[10].mxu0 %vm58_vm0, %v48_v23 }
  0xe7   :  { %3943 = vmatprep.mubr.msk.f32.mxu0 %vm4661_vm1, %v4662_v4 }
  0xee   :  { %v4565_v25 = vpop.eup %4564 }
  0xef   :  { %v314_v27 = vmul.f32 %v4565_v25, %v4767_v20 }
  0xf1   :  { %v315_v28 = vadd.f32 %v314_v27, %v4770_v26  ;;  %v4858_v27 = vpop.f32.mrb[4].mxu0 }
  0xf2   :  { %v187_v11 = vadd.f32 %v4858_v27, %v4764_v15 }
  0xf3   :  { %318 = vrot.lane.b32.xlu0 %v315_v28, %s4664_s18  ;;  %v316_v31 = vmul.f32 0.0, %v315_v28 }
 0x165   :  { %v319_v29 = vpop.permute.xlu0 %318 }
 0x166   :  { %v321_v30 = vmul.f32 %v319_v29, %v315_v28 }
 0x168   :  { %323 = vrot.lane.b32.xlu0 %v321_v30, %s4665_s19 }
 0x1da   :  { %v324_v32 = vpop.permute.xlu0 %323 }
 0x1db   :  { %v326_v33 = vadd.f32 %v324_v32, %v316_v31 }
 0x1dd   :  { %4566 = vtanh.f32 %v326_v33 }
 0x1e7   :  { %v4567_v34 = vpop.eup %4566 }
 0x1e8   :  { %329 = vrot.lane.b32.xlu1 %v4567_v34, %s4664_s18 }
 0x25a   :  { %v330_v35 = vpop.permute.xlu1 %329 }
 0x25b   :  { %v332_v36 = vmul.f32 %v330_v35, %v315_v28  ;;  %v181_v28 = vpop.f32.mrb[5].mxu0 }
 0x25c   :  { %v4860_v29 = vpop.f32.mrb[6].mxu0 }
 0x25d   :  { %335 = vrot.lane.b32.xlu1 %v332_v36, %s4665_s19  ;;  %v4862_v30 = vpop.f32.mrb[7].mxu0  ;;  %v177_v36 = vadd.f32 %v4804_v56, %v4764_v15 }
 0x25e   :  { %v4864_v31 = vpop.f32.mrb[8].mxu0 }
 0x25f   :  { %v4866_v32 = vpop.f32.mrb[9].mxu0 }
 0x2cf   :  { %v4778_v37 = vpop.permute.xlu1 %335 }
 0x2d0   :  { %3922 = vmatmul.mubr.msk.f32.vlgmr.msra.gmra.mrb[2].mxu1 %vm237_vm5, %v4778_v37 }
 0x2d1   :  { %4316 = vmatpush3.bf16.msra.mxu1 %v4726_v8  ;;  %3932 = vmatprep.mubr.msk.f32.mxu1 %vm4661_vm1, %v4662_v4 }
 0x2d2   :  { %4317 = vmatprep.subr.bf16.mxu1 %v4660_v0 }
 0x2d5   :  { %4319 = vmatpush3.bf16.msra.mxu1 %v4739_v12 }
 0x2d6   :  { %4326 = vmatprep.subr.bf16.mxu1 %v4660_v0 }
 0x3a3   :  { %v405_v39 = vpop.f32.mrb[2].mxu1 }
 0x3a4   :  { %v409_v40 = vadd.f32 %v405_v39, %v167_v38  ;;  %v3923_v41 = vpop.f32.mrb[3].mxu1 }
 0x3a6   :  { %v410_v42 = vmul.f32 %v409_v40, %v4767_v20 }
 0x3a8   :  { %4568 = vtanh.f32 %v410_v42 }
 0x3b2   :  { %v4569_v43 = vpop.eup %4568 }
 0x3b3   :  { %v412_v44 = vmul.f32 %v4569_v43, %v4767_v20 }
 0x3b5   :  { %v413_v45 = vadd.f32 %v412_v44, %v4770_v26 }
 0x3b7   :  { %416 = vrot.lane.b32.xlu0 %v413_v45, %s4664_s18  ;;  %v414_v48 = vmul.f32 %v413_v45, %v326_v33  ;;  %v4868_v33 = vpop.f32.mrb[10].mxu0 }
 0x3b8   :  { %v4870_v34 = vpop.f32.mrb[11].mxu0 }
 0x429   :  { %v417_v46 = vpop.permute.xlu0 %416 }
 0x42a   :  { %v419_v47 = vmul.f32 %v417_v46, %v413_v45 }
 0x42c   :  { %421 = vrot.lane.b32.xlu1 %v419_v47, %s4665_s19 }
 0x49e   :  { %v422_v49 = vpop.permute.xlu1 %421 }
 0x49f   :  { %v424_v50 = vadd.f32 %v422_v49, %v414_v48 }
 0x4a1   :  { %4570 = vtanh.f32 %v424_v50 }
 0x4ab   :  { %v4571_v53 = vpop.eup %4570 }
 0x4ac   :  { %427 = vrot.lane.b32.xlu0 %v4571_v53, %s4664_s18 }
 0x51e   :  { %v428_v54 = vpop.permute.xlu0 %427 }
 0x51f   :  { %v430_v55 = vmul.f32 %v428_v54, %v413_v45  ;;  %v182_v54 = vadd.f32 %v4764_v15, %v181_v28 }
 0x521   :  { %433 = vrot.lane.b32.xlu1 %v430_v55, %s4665_s19 }
 0x593   :  { %v4806_v58 = vpop.permute.xlu1 %433 }
 0x594   :  { %3933 = vmatmul.mubr.msk.f32.vlgmr.msra.gmra.mrb[4].mxu1 %vm237_vm5, %v4806_v58 }
 0x595   :  { %4328 = vmatpush3.bf16.msra.mxu1 %v4726_v8  ;;  %3954 = vmatprep.mubr.msk.f32.mxu1 %vm4661_vm1, %v4662_v4 }
 0x596   :  { %4329 = vmatprep.subr.bf16.mxu1 %v4660_v0 }
 0x599   :  { %4331 = vmatpush3.bf16.msra.mxu1 %v4739_v12 }
 0x59a   :  { %4338 = vmatprep.subr.bf16.mxu1 %v4660_v0 }
 0x667   :  { %v503_v60 = vpop.f32.mrb[4].mxu1 }
 0x668   :  { %v507_v61 = vadd.f32 %v503_v60, %v172_v59  ;;  %v3934_v62 = vpop.f32.mrb[5].mxu1 }
 0x66a   :  { %v508_v63 = vmul.f32 %v507_v61, %v4767_v20 }
 0x66c   :  { %4572 = vtanh.f32 %v508_v63 }
 0x676   :  { %v4573_v1 = vpop.eup %4572 }
 0x677   :  { %v510_v2 = vmul.f32 %v4573_v1, %v4767_v20 }
 0x679   :  { %v511_v3 = vadd.f32 %v510_v2, %v4770_v26 }
 0x67b   :  { %514 = vrot.lane.b32.xlu0 %v511_v3, %s4664_s18  ;;  %v512_v7 = vmul.f32 %v511_v3, %v424_v50 }
 0x6ed   :  { %v515_v5 = vpop.permute.xlu0 %514 }
 0x6ee   :  { %v517_v6 = vmul.f32 %v515_v5, %v511_v3 }
 0x6f0   :  { %519 = vrot.lane.b32.xlu1 %v517_v6, %s4665_s19 }
 0x762   :  { %v520_v9 = vpop.permute.xlu1 %519 }
 0x763   :  { %v522_v10 = vadd.f32 %v520_v9, %v512_v7 }
 0x765   :  { %4574 = vtanh.f32 %v522_v10 }
 0x76f   :  { %v4575_v22 = vpop.eup %4574 }
 0x770   :  { %525 = vrot.lane.b32.xlu0 %v4575_v22, %s4664_s18 }
 0x7e2   :  { %v526_v24 = vpop.permute.xlu0 %525 }
 0x7e3   :  { %v528_v25 = vmul.f32 %v526_v24, %v511_v3 }
 0x7e5   :  { %531 = vrot.lane.b32.xlu1 %v528_v25, %s4665_s19 }
 0x857   :  { %v4872_v35 = vpop.permute.xlu1 %531 }
 0x858   :  { %3944 = vmatmul.mubr.msk.f32.vlgmr.msra.gmra.mrb[12].mxu0 %vm237_vm5, %v4872_v35 }
 0x859   :  { %4334 = vmatpush3.bf16.msra.mxu0 %v4726_v8  ;;  %3965 = vmatprep.mubr.msk.f32.mxu0 %vm4661_vm1, %v4662_v4 }
 0x85a   :  { %4335 = vmatprep.subr.bf16.mxu0 %v4660_v0 }
 0x85d   :  { %4337 = vmatpush3.bf16.msra.mxu0 %v4739_v12 }
 0x85e   :  { %4344 = vmatprep.subr.bf16.mxu0 %v4660_v0 }
 0x92b   :  { %v601_v38 = vpop.f32.mrb[12].mxu0 }
 0x92c   :  { %v605_v39 = vadd.f32 %v601_v38, %v177_v36  ;;  %v3945_v40 = vpop.f32.mrb[13].mxu0 }
 0x92e   :  { %v606_v41 = vmul.f32 %v605_v39, %v4767_v20 }
 0x930   :  { %4576 = vtanh.f32 %v606_v41  ;;  %v192_v41 = vadd.f32 %v4764_v15, %v4862_v30 }
 0x93a   :  { %v4577_v42 = vpop.eup %4576 }
 0x93b   :  { %v608_v43 = vmul.f32 %v4577_v42, %v4767_v20 }
 0x93d   :  { %v609_v44 = vadd.f32 %v608_v43, %v4770_v26 }
 0x93f   :  { %612 = vrot.lane.b32.xlu0 %v609_v44, %s4664_s18  ;;  %v610_v47 = vmul.f32 %v609_v44, %v522_v10 }
 0x9b1   :  { %v613_v45 = vpop.permute.xlu0 %612 }
 0x9b2   :  { %v615_v46 = vmul.f32 %v613_v45, %v609_v44 }
 0x9b4   :  { %617 = vrot.lane.b32.xlu1 %v615_v46, %s4665_s19 }
 0xa26   :  { %v618_v48 = vpop.permute.xlu1 %617 }
 0xa27   :  { %v620_v49 = vadd.f32 %v618_v48, %v610_v47 }
 0xa29   :  { %4578 = vtanh.f32 %v620_v49 }
 0xa33   :  { %v4579_v50 = vpop.eup %4578 }
 0xa34   :  { %623 = vrot.lane.b32.xlu0 %v4579_v50, %s4664_s18 }
 0xaa6   :  { %v624_v51 = vpop.permute.xlu0 %623 }
 0xaa7   :  { %v626_v52 = vmul.f32 %v624_v51, %v609_v44 }
 0xaa9   :  { %629 = vrot.lane.b32.xlu1 %v626_v52, %s4665_s19 }
 0xb1b   :  { %v4891_v53 = vpop.permute.xlu1 %629 }
 0xb1c   :  { %3955 = vmatmul.mubr.msk.f32.vlgmr.msra.gmra.mrb[6].mxu1 %vm237_vm5, %v4891_v53 }
 0xb1d   :  { %4340 = vmatpush3.bf16.msra.mxu1 %v4726_v8  ;;  %3976 = vmatprep.mubr.msk.f32.mxu1 %vm4661_vm1, %v4662_v4 }
 0xb1e   :  { %4341 = vmatprep.subr.bf16.mxu1 %v4660_v0 }
 0xb21   :  { %4343 = vmatpush3.bf16.msra.mxu1 %v4739_v12 }
 0xb22   :  { %4350 = vmatprep.subr.bf16.mxu1 %v4660_v0 }
 0xbef   :  { %v699_v55 = vpop.f32.mrb[6].mxu1 }
 0xbf0   :  { %v703_v56 = vadd.f32 %v699_v55, %v182_v54  ;;  %v3956_v57 = vpop.f32.mrb[7].mxu1 }
 0xbf2   :  { %v704_v59 = vmul.f32 %v703_v56, %v4767_v20 }
 0xbf4   :  { %4580 = vtanh.f32 %v704_v59  ;;  %v197_v59 = vadd.f32 %v4860_v29, %v4764_v15 }
 0xbfe   :  { %v4581_v60 = vpop.eup %4580 }
 0xbff   :  { %v706_v61 = vmul.f32 %v4581_v60, %v4767_v20 }
 0xc01   :  { %v707_v62 = vadd.f32 %v706_v61, %v4770_v26 }
 0xc03   :  { %710 = vrot.lane.b32.xlu0 %v707_v62, %s4664_s18  ;;  %v708_v2 = vmul.f32 %v707_v62, %v620_v49 }
 0xc75   :  { %v711_v63 = vpop.permute.xlu0 %710 }
 0xc76   :  { %v713_v1 = vmul.f32 %v711_v63, %v707_v62 }
 0xc78   :  { %715 = vrot.lane.b32.xlu1 %v713_v1, %s4665_s19 }
 0xcea   :  { %v716_v3 = vpop.permute.xlu1 %715 }
 0xceb   :  { %v718_v5 = vadd.f32 %v716_v3, %v708_v2 }
 0xced   :  { %4582 = vtanh.f32 %v718_v5 }
 0xcf7   :  { %v4583_v6 = vpop.eup %4582 }
 0xcf8   :  { %721 = vrot.lane.b32.xlu0 %v4583_v6, %s4664_s18 }
 0xd6a   :  { %v722_v7 = vpop.permute.xlu0 %721 }
 0xd6b   :  { %v724_v9 = vmul.f32 %v722_v7, %v707_v62 }
 0xd6d   :  { %727 = vrot.lane.b32.xlu1 %v724_v9, %s4665_s19 }
 0xddf   :  { %v4909_v10 = vpop.permute.xlu1 %727 }
 0xde0   :  { %3966 = vmatmul.mubr.msk.f32.vlgmr.msra.gmra.mrb[14].mxu0 %vm237_vm5, %v4909_v10 }
 0xde1   :  { %4346 = vmatpush3.bf16.msra.mxu0 %v4726_v8  ;;  %3987 = vmatprep.mubr.msk.f32.mxu0 %vm4661_vm1, %v4662_v4 }
 0xde2   :  { %4347 = vmatprep.subr.bf16.mxu0 %v4660_v0 }
 0xde5   :  { %4349 = vmatpush3.bf16.msra.mxu0 %v4739_v12 }
 0xde6   :  { %4356 = vmatprep.subr.bf16.mxu0 %v4660_v0 }
 0xeb3   :  { %v797_v13 = vpop.f32.mrb[14].mxu0 }
 0xeb4   :  { %v801_v16 = vadd.f32 %v797_v13, %v187_v11  ;;  %v3967_v17 = vpop.f32.mrb[15].mxu0 }
 0xeb6   :  { %v802_v18 = vmul.f32 %v801_v16, %v4767_v20 }
 0xeb8   :  { %4584 = vtanh.f32 %v802_v18  ;;  %v202_v18 = vadd.f32 %v4764_v15, %v4866_v32 }
 0xec2   :  { %v4585_v19 = vpop.eup %4584 }
 0xec3   :  { %v804_v21 = vmul.f32 %v4585_v19, %v4767_v20 }
 0xec5   :  { %v805_v22 = vadd.f32 %v804_v21, %v4770_v26 }
 0xec7   :  { %808 = vrot.lane.b32.xlu0 %v805_v22, %s4664_s18  ;;  %v806_v25 = vmul.f32 %v805_v22, %v718_v5 }
 0xf39   :  { %v809_v23 = vpop.permute.xlu0 %808 }
 0xf3a   :  { %v811_v24 = vmul.f32 %v809_v23, %v805_v22 }
 0xf3c   :  { %813 = vrot.lane.b32.xlu1 %v811_v24, %s4665_s19 }
 0xfae   :  { %v814_v28 = vpop.permute.xlu1 %813 }
 0xfaf   :  { %v816_v27 = vadd.f32 %v814_v28, %v806_v25 }
 0xfb1   :  { %4586 = vtanh.f32 %v816_v27 }
 0xfbb   :  { %v4587_v36 = vpop.eup %4586 }
 0xfbc   :  { %819 = vrot.lane.b32.xlu0 %v4587_v36, %s4664_s18 }
0x102e   :  { %v820_v38 = vpop.permute.xlu0 %819 }
0x102f   :  { %v822_v39 = vmul.f32 %v820_v38, %v805_v22 }
0x1031   :  { %825 = vrot.lane.b32.xlu1 %v822_v39, %s4665_s19 }
0x10a3   :  { %v4928_v40 = vpop.permute.xlu1 %825 }
0x10a4   :  { %3977 = vmatmul.mubr.msk.f32.vlgmr.msra.gmra.mrb[8].mxu1 %vm237_vm5, %v4928_v40 }
0x10a5   :  { %4352 = vmatpush3.bf16.msra.mxu1 %v4726_v8  ;;  %3998 = vmatprep.mubr.msk.f32.mxu1 %vm4661_vm1, %v4662_v4 }
0x10a6   :  { %4353 = vmatprep.subr.bf16.mxu1 %v4660_v0 }
0x10a9   :  { %4355 = vmatpush3.bf16.msra.mxu1 %v4739_v12 }
0x10aa   :  { %4362 = vmatprep.subr.bf16.mxu1 %v4660_v0 }
0x1177   :  { %v895_v42 = vpop.f32.mrb[8].mxu1 }
0x1178   :  { %v899_v43 = vadd.f32 %v895_v42, %v192_v41  ;;  %v3978_v44 = vpop.f32.mrb[9].mxu1 }
0x117a   :  { %v900_v45 = vmul.f32 %v899_v43, %v4767_v20 }
0x117c   :  { %4588 = vtanh.f32 %v900_v45  ;;  %v207_v45 = vadd.f32 %v4864_v31, %v4764_v15 }
0x1186   :  { %v4589_v46 = vpop.eup %4588 }
0x1187   :  { %v902_v47 = vmul.f32 %v4589_v46, %v4767_v20 }
0x1189   :  { %v903_v48 = vadd.f32 %v902_v47, %v4770_v26 }
0x118b   :  { %906 = vrot.lane.b32.xlu0 %v903_v48, %s4664_s18  ;;  %v904_v51 = vmul.f32 %v903_v48, %v816_v27 }
0x11fd   :  { %v907_v49 = vpop.permute.xlu0 %906 }
0x11fe   :  { %v909_v50 = vmul.f32 %v907_v49, %v903_v48 }
0x1200   :  { %911 = vrot.lane.b32.xlu1 %v909_v50, %s4665_s19 }
0x1272   :  { %v912_v52 = vpop.permute.xlu1 %911 }
0x1273   :  { %v914_v30 = vadd.f32 %v912_v52, %v904_v51 }
0x1275   :  { %4590 = vtanh.f32 %v914_v30 }
0x127f   :  { %v4591_v54 = vpop.eup %4590 }
0x1280   :  { %917 = vrot.lane.b32.xlu0 %v4591_v54, %s4664_s18 }
0x12f2   :  { %v918_v55 = vpop.permute.xlu0 %917 }
0x12f3   :  { %v920_v56 = vmul.f32 %v918_v55, %v903_v48 }
0x12f5   :  { %923 = vrot.lane.b32.xlu1 %v920_v56, %s4665_s19 }
0x1367   :  { %v4947_v57 = vpop.permute.xlu1 %923 }
0x1368   :  { %3988 = vmatmul.mubr.msk.f32.vlgmr.msra.gmra.mrb[16].mxu0 %vm237_vm5, %v4947_v57 }
0x1369   :  { %4358 = vmatpush3.bf16.msra.mxu0 %v4726_v8  ;;  %4009 = vmatprep.mubr.msk.f32.mxu0 %vm4661_vm1, %v4662_v4 }
0x136a   :  { %4359 = vmatprep.subr.bf16.mxu0 %v4660_v0 }
0x136d   :  { %4361 = vmatpush3.bf16.msra.mxu0 %v4739_v12 }
0x136e   :  { %4368 = vmatprep.subr.bf16.mxu0 %v4660_v0 }
0x143b   :  { %v993_v60 = vpop.f32.mrb[16].mxu0 }
0x143c   :  { %v997_v61 = vadd.f32 %v993_v60, %v197_v59  ;;  %v3989_v62 = vpop.f32.mrb[17].mxu0  ;;  %v1416_v60 = vld [vmem:[%s5421_s2] sm:$0xff] }
0x143e   :  { %v998_v63 = vmul.f32 %v997_v61, %v4767_v20  ;;  %v1417_v61 = vld [vmem:[%s5421_s2 + $0x8] sm:$0xff] }
0x143f   :  { %v5013_v62 = vpack.c.bf16 %v1417_v61, %v1416_v60 }
0x1440   :  { %4592 = vtanh.f32 %v998_v63  ;;  %v1418_v63 = vld [vmem:[%s5421_s2 + $0x10] sm:$0xff] }
0x144a   :  { %v4593_v1 = vpop.eup %4592 }
0x144b   :  { %v1000_v2 = vmul.f32 %v4593_v1, %v4767_v20  ;;  %v1419_v1 = vld [vmem:[%s5421_s2 + $0x18] sm:$0xff] }
0x144d   :  { %v1001_v3 = vadd.f32 %v1000_v2, %v4770_v26 }
0x144f   :  { %1004 = vrot.lane.b32.xlu0 %v1001_v3, %s4664_s18  ;;  %v1002_v7 = vmul.f32 %v1001_v3, %v914_v30 }
0x14c1   :  { %v1005_v5 = vpop.permute.xlu0 %1004 }
0x14c2   :  { %v1007_v6 = vmul.f32 %v1005_v5, %v1001_v3  ;;  %v3646_v5 = vld [vmem:[%s5418_s3 + $0x20] sm:$0xff] }
0x14c4   :  { %1009 = vrot.lane.b32.xlu1 %v1007_v6, %s4665_s19  ;;  %v3647_v6 = vld [vmem:[%s5418_s3 + $0x28] sm:$0xff] }
0x1536   :  { %v1010_v9 = vpop.permute.xlu1 %1009 }
0x1537   :  { %v1012_v29 = vadd.f32 %v1010_v9, %v1002_v7  ;;  %v5038_v7 = vpack.c.bf16 %v3647_v6, %v3646_v5  ;;  %v3648_v9 = vld [vmem:[%s5418_s3 + $0x30] sm:$0xff] }
0x1539   :  { %4594 = vtanh.f32 %v1012_v29 }
0x1543   :  { %v4595_v11 = vpop.eup %4594 }
0x1544   :  { %1015 = vrot.lane.b32.xlu0 %v4595_v11, %s4664_s18 }
0x15b6   :  { %v1016_v13 = vpop.permute.xlu0 %1015 }
0x15b7   :  { %v1018_v16 = vmul.f32 %v1016_v13, %v1001_v3  ;;  %v5026_v3 = vpack.c.bf16 %v1419_v1, %v1418_v63 }
0x15b9   :  { %1021 = vrot.lane.b32.xlu1 %v1018_v16, %s4665_s19 }
0x162b   :  { %v4966_v17 = vpop.permute.xlu1 %1021 }
0x162c   :  { %3999 = vmatmul.mubr.msk.f32.vlgmr.msra.gmra.mrb[10].mxu1 %vm237_vm5, %v4966_v17 }
0x162d   :  { %4364 = vmatpush3.bf16.msra.mxu1 %v4726_v8  ;;  %4020 = vmatprep.mubr.msk.f32.mxu1 %vm4661_vm1, %v4662_v4 }
0x162e   :  { %4365 = vmatprep.subr.bf16.mxu1 %v4660_v0 }
0x1631   :  { %4367 = vmatpush3.bf16.msra.mxu1 %v4739_v12 }
0x1632   :  { %4374 = vmatprep.subr.bf16.mxu1 %v4660_v0 }
0x16ff   :  { %v1091_v19 = vpop.f32.mrb[10].mxu1 }
0x1700   :  { %v1095_v21 = vadd.f32 %v1091_v19, %v202_v18  ;;  %v4000_v22 = vpop.f32.mrb[11].mxu1 }
0x1702   :  { %v1096_v23 = vmul.f32 %v1095_v21, %v4767_v20 }
0x1704   :  { %4596 = vtanh.f32 %v1096_v23 }
0x170e   :  { %v4597_v24 = vpop.eup %4596 }
0x170f   :  { %v1098_v25 = vmul.f32 %v4597_v24, %v4767_v20 }
0x1711   :  { %v1099_v28 = vadd.f32 %v1098_v25, %v4770_v26 }
0x1713   :  { %1102 = vrot.lane.b32.xlu0 %v1099_v28, %s4664_s18  ;;  %v1100_v38 = vmul.f32 %v1099_v28, %v1012_v29  ;;  %v3649_v29 = vld [vmem:[%s5418_s3 + $0x38] sm:$0xff] }
0x1714   :  { %v5050_v11 = vpack.c.bf16 %v3649_v29, %v3648_v9 }
0x1785   :  { %v1103_v27 = vpop.permute.xlu0 %1102 }
0x1786   :  { %v1105_v36 = vmul.f32 %v1103_v27, %v1099_v28 }
0x1788   :  { %1107 = vrot.lane.b32.xlu1 %v1105_v36, %s4665_s19 }
0x17fa   :  { %v1108_v39 = vpop.permute.xlu1 %1107 }
0x17fb   :  { %v1110_v32 = vadd.f32 %v1108_v39, %v1100_v38 }
0x17fd   :  { %4598 = vtanh.f32 %v1110_v32 }
0x1807   :  { %v4599_v41 = vpop.eup %4598 }
0x1808   :  { %1113 = vrot.lane.b32.xlu0 %v4599_v41, %s4664_s18 }
0x187a   :  { %v1114_v42 = vpop.permute.xlu0 %1113 }
0x187b   :  { %v1116_v43 = vmul.f32 %v1114_v42, %v1099_v28 }
0x187d   :  { %1119 = vrot.lane.b32.xlu1 %v1116_v43, %s4665_s19 }
0x18ef   :  { %v4985_v44 = vpop.permute.xlu1 %1119 }
0x18f0   :  { %4010 = vmatmul.mubr.msk.f32.vlgmr.msra.gmra.mrb[18].mxu0 %vm237_vm5, %v4985_v44 }
0x18f1   :  { %4370 = vmatpush3.bf16.msra.mxu0 %v4726_v8  ;;  %4031 = vmatprep.mubr.msk.f32.mxu0 %vm4661_vm1, %v4662_v4 }
0x18f2   :  { %4371 = vmatprep.subr.bf16.mxu0 %v4660_v0 }
0x18f5   :  { %4373 = vmatpush3.bf16.msra.mxu0 %v4739_v12 }
0x18f6   :  { %4386 = vmatprep.subr.bf16.mxu0 %v4660_v0 }
0x19c3   :  { %v1189_v46 = vpop.f32.mrb[18].mxu0 }
0x19c4   :  { %v1193_v47 = vadd.f32 %v1189_v46, %v207_v45  ;;  %v4011_v48 = vpop.f32.mrb[19].mxu0 }
0x19c6   :  { %v1194_v49 = vmul.f32 %v1193_v47, %v4767_v20 }
0x19c8   :  { %4600 = vtanh.f32 %v1194_v49 }
0x19d2   :  { %v4601_v50 = vpop.eup %4600 }
0x19d3   :  { %v1196_v8 = vmul.f32 %v4601_v50, %v4767_v20 }
0x19d5   :  { %v1197_v51 = vadd.f32 %v1196_v8, %v4770_v26 }
0x19d7   :  { %1200 = vrot.lane.b32.xlu0 %v1197_v51, %s4664_s18  ;;  %v1198_v30 = vmul.f32 %v1197_v51, %v1110_v32 }
0x1a49   :  { %v1201_v52 = vpop.permute.xlu0 %1200 }
0x1a4a   :  { %v1203_v12 = vmul.f32 %v1201_v52, %v1197_v51 }
0x1a4c   :  { %1205 = vrot.lane.b32.xlu1 %v1203_v12, %s4665_s19 }
0x1abe   :  { %v1206_v54 = vpop.permute.xlu1 %1205 }
0x1abf   :  { %v5002_v31 = vadd.f32 %v1206_v54, %v1198_v30 }
0x1ac1   :  { %4602 = vtanh.f32 %v5002_v31 }
0x1acb   :  { %v4603_v55 = vpop.eup %4602 }
0x1acc   :  { %1211 = vrot.lane.b32.xlu0 %v4603_v55, %s4664_s18 }
0x1b3e   :  { %v1212_v56 = vpop.permute.xlu0 %1211 }
0x1b3f   :  { %v1214_v59 = vmul.f32 %v1212_v56, %v1197_v51 }
0x1b41   :  { %1217 = vrot.lane.b32.xlu1 %v1214_v59, %s4665_s19 }
0x1bb3   :  { %v5021_v2 = vpop.permute.xlu1 %1217 }
0x1bb4   :  { %4021 = vmatmul.mubr.msk.f32.vlgmr.msra.gmra.mrb[12].mxu1 %vm237_vm5, %v5021_v2 }
0x1bb5   :  { %4376 = vmatpush3.bf16.msra.mxu1 %v5013_v62  ;;  %4042 = vmatprep.mubr.msk.f32.mxu1 %vm4661_vm1, %v4662_v4 }
0x1bb6   :  { %4377 = vmatprep.subr.bf16.mxu1 %v4660_v0 }
0x1bb9   :  { %4379 = vmatpush3.bf16.msra.mxu1 %v5026_v3 }
0x1bba   :  { %4380 = vmatprep.subr.bf16.mxu1 %v4660_v0 }
0x1bbc   :  { %4043 = vmatmul.mubr.msk.f32.vlgmr.msra.gmra.mrb[14].mxu1 %vm237_vm5, %v4778_v37  ;;  %v212_v37 = vadd.f32 %v4764_v15, %v4870_v34 }
0x1bbd   :  { %4382 = vmatpush3.bf16.msra.mxu1 %v5038_v7  ;;  %4053 = vmatprep.mubr.msk.f32.mxu1 %vm4661_vm1, %v4662_v4 }
0x1bbe   :  { %4383 = vmatprep.subr.bf16.mxu1 %v4660_v0 }
0x1bc1   :  { %4385 = vmatpush3.bf16.msra.mxu1 %v5050_v11 }
0x1bc2   :  { %4398 = vmatprep.subr.bf16.mxu1 %v4660_v0 }
0x1bc4   :  { %4054 = vmatmul.mubr.f32.vlgmr.msra.gmra.mrb[14].mxu1 %v4662_v4 }
0x1bc5   :  { %4400 = vmatpush3.bf16.msra.mxu1 %v5013_v62  ;;  %4086 = vmatprep.mubr.msk.f32.mxu1 %vm4661_vm1, %v4662_v4 }
0x1bc6   :  { %4401 = vmatprep.subr.bf16.mxu1 %v4660_v0 }
0x1bc9   :  { %4403 = vmatpush3.bf16.msra.mxu1 %v5026_v3 }
0x1bca   :  { %4404 = vmatprep.subr.bf16.mxu1 %v4660_v0 }
0x1bcc   :  { %4087 = vmatmul.mubr.msk.f32.vlgmr.msra.gmra.mrb[16].mxu1 %vm237_vm5, %v4872_v35  ;;  %v5078_v35 = vld [vmem:[%s5420_s4 + $0x1] ss:$0 sm:$0xff] }
0x1bcd   :  { %4406 = vmatpush3.bf16.msra.mxu1 %v5038_v7  ;;  %4097 = vmatprep.mubr.msk.f32.mxu1 %vm4661_vm1, %v4662_v4 }
0x1bce   :  { %4407 = vmatprep.subr.bf16.mxu1 %v4660_v0 }
0x1bd1   :  { %4409 = vmatpush3.bf16.msra.mxu1 %v5050_v11 }
0x1bd2   :  { %4422 = vmatprep.subr.bf16.mxu1 %v4660_v0 }
0x1c87   :  { %v1287_v13 = vpop.f32.mrb[12].mxu1 }
0x1c88   :  { %v1291_v16 = vadd.f32 %v1287_v13, %v212_v37  ;;  %v4022_v18 = vpop.f32.mrb[13].mxu1 }
0x1c8a   :  { %v1292_v19 = vmul.f32 %v1291_v16, %v4767_v20 }
0x1c8c   :  { %4604 = vtanh.f32 %v1292_v19 }
0x1c96   :  { %v4605_v21 = vpop.eup %4604 }
0x1c97   :  { %v1564_v22 = vpop.f32.mrb[14].mxu1  ;;  %v1294_v23 = vmul.f32 %v4605_v21, %v4767_v20 }
0x1c98   :  { %v4518_v24 = vadd.f32 %v5078_v35, %v1564_v22  ;;  %v4055_v25 = vpop.f32.mrb[15].mxu1 }
0x1c99   :  { %v1295_v34 = vadd.f32 %v1294_v23, %v4770_v26 }
0x1c9a   :  { %v1569_v28 = vmul.f32 %v4518_v24, %v4767_v20 }
0x1c9b   :  { %1298 = vrot.lane.b32.xlu0 %v1295_v34, %s4664_s18  ;;  %v1296_v43 = vmul.f32 %v1295_v34, %v5002_v31 }
0x1c9c   :  { %4606 = vtanh.f32 %v1569_v28 }
0x1ca6   :  { %v4607_v27 = vpop.eup %4606 }
0x1ca7   :  { %v1571_v36 = vmul.f32 %v4607_v27, %v4767_v20 }
0x1ca9   :  { %v1572_v38 = vadd.f32 %v1571_v36, %v4770_v26 }
0x1cab   :  { %1575 = vrot.lane.b32.xlu1 %v1572_v38, %s4664_s18  ;;  %v1573_v48 = vmul.f32 0.0, %v1572_v38 }
0x1d0d   :  { %v1299_v39 = vpop.permute.xlu0 %1298 }
0x1d0e   :  { %v1301_v32 = vmul.f32 %v1299_v39, %v1295_v34 }
0x1d10   :  { %1303 = vrot.lane.b32.xlu0 %v1301_v32, %s4665_s19 }
0x1d1d   :  { %v1576_v41 = vpop.permute.xlu1 %1575 }
0x1d1e   :  { %v1578_v42 = vmul.f32 %v1576_v41, %v1572_v38 }
0x1d20   :  { %1580 = vrot.lane.b32.xlu1 %v1578_v42, %s4665_s19 }
0x1d82   :  { %v1304_v45 = vpop.permute.xlu0 %1303 }
0x1d83   :  { %v5091_v46 = vadd.f32 %v1304_v45, %v1296_v43 }
0x1d85   :  { %4608 = vtanh.f32 %v5091_v46 }
0x1d8f   :  { %v4609_v47 = vpop.eup %4608 }
0x1d90   :  { %1309 = vrot.lane.b32.xlu0 %v4609_v47, %s4664_s18 }
0x1d92   :  { %v1581_v49 = vpop.permute.xlu1 %1580 }
0x1d93   :  { %v1583_v50 = vadd.f32 %v1581_v49, %v1573_v48 }
0x1d95   :  { %4610 = vtanh.f32 %v1583_v50 }
0x1d9f   :  { %v4611_v8 = vpop.eup %4610 }
0x1da0   :  { %1586 = vrot.lane.b32.xlu1 %v4611_v8, %s4664_s18 }
0x1e02   :  { %v1310_v51 = vpop.permute.xlu0 %1309 }
0x1e03   :  { %v1312_v52 = vmul.f32 %v1310_v51, %v1295_v34 }
0x1e05   :  { %1315 = vrot.lane.b32.xlu0 %v1312_v52, %s4665_s19 }
0x1e12   :  { %v1587_v12 = vpop.permute.xlu1 %1586 }
0x1e13   :  { %v1589_v30 = vmul.f32 %v1587_v12, %v1572_v38 }
0x1e15   :  { %1661 = vrot.lane.b32.xlu1 %v1589_v30, %s4665_s19 }
0x1e77   :  { %v5098_v54 = vpop.permute.xlu0 %1315 }
0x1e78   :  { %4032 = vmatmul.mubr.msk.f32.vlgmr.msra.gmra.mrb[20].mxu0 %vm237_vm5, %v5098_v54 }
0x1e79   :  { %4388 = vmatpush3.bf16.msra.mxu0 %v5013_v62  ;;  %4064 = vmatprep.mubr.msk.f32.mxu0 %vm4661_vm1, %v4662_v4 }
0x1e7a   :  { %4389 = vmatprep.subr.bf16.mxu0 %v4660_v0 }
0x1e7d   :  { %4391 = vmatpush3.bf16.msra.mxu0 %v5026_v3 }
0x1e7e   :  { %4392 = vmatprep.subr.bf16.mxu0 %v4660_v0 }
0x1e80   :  { %4065 = vmatmul.mubr.msk.f32.vlgmr.msra.gmra.mrb[22].mxu0 %vm237_vm5, %v4806_v58  ;;  %v217_v58 = vadd.f32 %v4868_v33, %v4764_v15 }
0x1e81   :  { %4394 = vmatpush3.bf16.msra.mxu0 %v5038_v7  ;;  %4075 = vmatprep.mubr.msk.f32.mxu0 %vm4661_vm1, %v4662_v4 }
0x1e82   :  { %4395 = vmatprep.subr.bf16.mxu0 %v4660_v0 }
0x1e85   :  { %4397 = vmatpush3.bf16.msra.mxu0 %v5050_v11 }
0x1e86   :  { %4410 = vmatprep.subr.bf16.mxu0 %v4660_v0 }
0x1e87   :  { %v1662_v31 = vpop.permute.xlu1 %1661 }
0x1e88   :  { %4076 = vmatmul.mubr.msk.f32.vlgmr.msra.gmra.mrb[22].mxu0 %vm237_vm5, %v1662_v31 }
0x1e89   :  { %4412 = vmatpush3.bf16.msra.mxu0 %v5013_v62  ;;  %4108 = vmatprep.mubr.msk.f32.mxu0 %vm4661_vm1, %v4662_v4 }
0x1e8a   :  { %4413 = vmatprep.subr.bf16.mxu0 %v4660_v0 }
0x1e8d   :  { %4415 = vmatpush3.bf16.msra.mxu0 %v5026_v3 }
0x1e8e   :  { %4416 = vmatprep.subr.bf16.mxu0 %v4660_v0 }
0x1e90   :  { %4109 = vmatmul.mubr.msk.f32.vlgmr.msra.gmra.mrb[24].mxu0 %vm237_vm5, %v4891_v53 }
0x1e91   :  { %4418 = vmatpush3.bf16.msra.mxu0 %v5038_v7  ;;  %4119 = vmatprep.mubr.msk.f32.mxu0 %vm4661_vm1, %v4662_v4 }
0x1e92   :  { %4419 = vmatprep.subr.bf16.mxu0 %v4660_v0 }
0x1e95   :  { %4421 = vmatpush3.bf16.msra.mxu0 %v5050_v11 }
0x1e96   :  { %4434 = vmatprep.subr.bf16.mxu0 %v4660_v0 }
0x1f4b   :  { %v1385_v55 = vpop.f32.mrb[20].mxu0 }
0x1f4c   :  { %v5133_v56 = vadd.f32 %v1385_v55, %v217_v58  ;;  %v4033_v59 = vpop.f32.mrb[21].mxu0 }
0x1f5b   :  { %v1731_v60 = vpop.f32.mrb[22].mxu0 }
0x1f5c   :  { %v4519_v53 = vadd.f32 %v5078_v35, %v1731_v60  ;;  %v4077_v61 = vpop.f32.mrb[23].mxu0 }
0x1f5e   :  { %v1736_v63 = vmul.f32 %v4519_v53, %v4767_v20 }
0x1f60   :  { %4612 = vtanh.f32 %v1736_v63 }
0x1f6a   :  { %v4613_v1 = vpop.eup %4612 }
0x1f6b   :  { %v1738_v5 = vmul.f32 %v4613_v1, %v4767_v20 }
0x1f6d   :  { %v1739_v6 = vadd.f32 %v1738_v5, %v4770_v26 }
0x1f6f   :  { %1742 = vrot.lane.b32.xlu0 %v1739_v6, %s4664_s18  ;;  %v1740_v33 = vmul.f32 %v1739_v6, %v1583_v50 }
0x1fe1   :  { %v1743_v9 = vpop.permute.xlu0 %1742 }
0x1fe2   :  { %v1745_v15 = vmul.f32 %v1743_v9, %v1739_v6 }
0x1fe4   :  { %1747 = vrot.lane.b32.xlu1 %v1745_v15, %s4665_s19 }
0x2056   :  { %v1748_v29 = vpop.permute.xlu1 %1747 }
0x2057   :  { %v1750_v37 = vadd.f32 %v1748_v29, %v1740_v33 }
0x2059   :  { %4614 = vtanh.f32 %v1750_v37 }
0x2063   :  { %v4615_v13 = vpop.eup %4614 }
0x2064   :  { %1753 = vrot.lane.b32.xlu0 %v4615_v13, %s4664_s18 }
0x20d6   :  { %v1754_v16 = vpop.permute.xlu0 %1753 }
0x20d7   :  { %v1756_v18 = vmul.f32 %v1754_v16, %v1739_v6 }
0x20d9   :  { %1828 = vrot.lane.b32.xlu1 %v1756_v18, %s4665_s19 }
0x214b   :  { %v1829_v19 = vpop.permute.xlu1 %1828 }
0x214c   :  { %4098 = vmatmul.mubr.msk.f32.vlgmr.msra.gmra.mrb[16].mxu1 %vm237_vm5, %v1829_v19 }
0x214d   :  { %4424 = vmatpush3.bf16.msra.mxu1 %v5013_v62  ;;  %4130 = vmatprep.mubr.msk.f32.mxu1 %vm4661_vm1, %v4662_v4 }
0x214e   :  { %4425 = vmatprep.subr.bf16.mxu1 %v4660_v0 }
0x2151   :  { %4427 = vmatpush3.bf16.msra.mxu1 %v5026_v3 }
0x2152   :  { %4428 = vmatprep.subr.bf16.mxu1 %v4660_v0 }
0x2154   :  { %4131 = vmatmul.mubr.msk.f32.vlgmr.msra.gmra.mrb[18].mxu1 %vm237_vm5, %v4909_v10 }
0x2155   :  { %4430 = vmatpush3.bf16.msra.mxu1 %v5038_v7  ;;  %4141 = vmatprep.mubr.msk.f32.mxu1 %vm4661_vm1, %v4662_v4 }
0x2156   :  { %4431 = vmatprep.subr.bf16.mxu1 %v4660_v0 }
0x2159   :  { %4433 = vmatpush3.bf16.msra.mxu1 %v5050_v11 }
0x215a   :  { %4446 = vmatprep.subr.bf16.mxu1 %v4660_v0 }
0x221f   :  { %v1898_v21 = vpop.f32.mrb[16].mxu1 }
0x2220   :  { %v4520_v22 = vadd.f32 %v5078_v35, %v1898_v21  ;;  %v4099_v23 = vpop.f32.mrb[17].mxu1 }
0x2222   :  { %v1903_v24 = vmul.f32 %v4520_v22, %v4767_v20 }
0x2224   :  { %4616 = vtanh.f32 %v1903_v24 }
0x222e   :  { %v4617_v25 = vpop.eup %4616 }
0x222f   :  { %v1905_v10 = vmul.f32 %v4617_v25, %v4767_v20 }
0x2231   :  { %v1906_v34 = vadd.f32 %v1905_v10, %v4770_v26 }
0x2233   :  { %1909 = vrot.lane.b32.xlu0 %v1906_v34, %s4664_s18  ;;  %v1907_v36 = vmul.f32 %v1906_v34, %v1750_v37 }
0x22a5   :  { %v1910_v28 = vpop.permute.xlu0 %1909 }
0x22a6   :  { %v1912_v27 = vmul.f32 %v1910_v28, %v1906_v34 }
0x22a8   :  { %1914 = vrot.lane.b32.xlu1 %v1912_v27, %s4665_s19 }
0x231a   :  { %v1915_v38 = vpop.permute.xlu1 %1914 }
0x231b   :  { %v1917_v39 = vadd.f32 %v1915_v38, %v1907_v36 }
0x231d   :  { %4618 = vtanh.f32 %v1917_v39 }
0x2327   :  { %v4619_v32 = vpop.eup %4618 }
0x2328   :  { %1920 = vrot.lane.b32.xlu0 %v4619_v32, %s4664_s18 }
0x239a   :  { %v1921_v41 = vpop.permute.xlu0 %1920 }
0x239b   :  { %v1923_v42 = vmul.f32 %v1921_v41, %v1906_v34 }
0x239d   :  { %1995 = vrot.lane.b32.xlu1 %v1923_v42, %s4665_s19 }
0x240f   :  { %v1996_v43 = vpop.permute.xlu1 %1995 }
0x2410   :  { %4120 = vmatmul.mubr.msk.f32.vlgmr.msra.gmra.mrb[24].mxu0 %vm237_vm5, %v1996_v43 }
0x2411   :  { %4436 = vmatpush3.bf16.msra.mxu0 %v5013_v62  ;;  %4152 = vmatprep.mubr.msk.f32.mxu0 %vm4661_vm1, %v4662_v4 }
0x2412   :  { %4437 = vmatprep.subr.bf16.mxu0 %v4660_v0 }
0x2415   :  { %4439 = vmatpush3.bf16.msra.mxu0 %v5026_v3 }
0x2416   :  { %4440 = vmatprep.subr.bf16.mxu0 %v4660_v0 }
0x2418   :  { %4153 = vmatmul.mubr.msk.f32.vlgmr.msra.gmra.mrb[26].mxu0 %vm237_vm5, %v4928_v40 }
0x2419   :  { %4442 = vmatpush3.bf16.msra.mxu0 %v5038_v7  ;;  %4163 = vmatprep.mubr.msk.f32.mxu0 %vm4661_vm1, %v4662_v4 }
0x241a   :  { %4443 = vmatprep.subr.bf16.mxu0 %v4660_v0 }
0x241d   :  { %4445 = vmatpush3.bf16.msra.mxu0 %v5050_v11 }
0x241e   :  { %4458 = vmatprep.subr.bf16.mxu0 %v4660_v0 }
0x24e3   :  { %v2065_v45 = vpop.f32.mrb[24].mxu0 }
0x24e4   :  { %v4521_v47 = vadd.f32 %v5078_v35, %v2065_v45  ;;  %v4121_v48 = vpop.f32.mrb[25].mxu0 }
0x24e6   :  { %v2070_v49 = vmul.f32 %v4521_v47, %v4767_v20 }
0x24e8   :  { %4620 = vtanh.f32 %v2070_v49 }
0x24f2   :  { %v4621_v50 = vpop.eup %4620 }
0x24f3   :  { %v2072_v40 = vmul.f32 %v4621_v50, %v4767_v20 }
0x24f5   :  { %v2073_v8 = vadd.f32 %v2072_v40, %v4770_v26 }
0x24f7   :  { %2076 = vrot.lane.b32.xlu0 %v2073_v8, %s4664_s18  ;;  %v2074_v12 = vmul.f32 %v2073_v8, %v1917_v39 }
0x2569   :  { %v2077_v51 = vpop.permute.xlu0 %2076 }
0x256a   :  { %v2079_v52 = vmul.f32 %v2077_v51, %v2073_v8 }
0x256c   :  { %2081 = vrot.lane.b32.xlu1 %v2079_v52, %s4665_s19 }
0x25de   :  { %v2082_v30 = vpop.permute.xlu1 %2081 }
0x25df   :  { %v2084_v31 = vadd.f32 %v2082_v30, %v2074_v12 }
0x25e1   :  { %4622 = vtanh.f32 %v2084_v31 }
0x25eb   :  { %v4623_v58 = vpop.eup %4622 }
0x25ec   :  { %2087 = vrot.lane.b32.xlu0 %v4623_v58, %s4664_s18 }
0x265e   :  { %v2088_v55 = vpop.permute.xlu0 %2087 }
0x265f   :  { %v2090_v59 = vmul.f32 %v2088_v55, %v2073_v8 }
0x2661   :  { %2162 = vrot.lane.b32.xlu1 %v2090_v59, %s4665_s19 }
0x26d3   :  { %v2163_v60 = vpop.permute.xlu1 %2162 }
0x26d4   :  { %4142 = vmatmul.mubr.msk.f32.vlgmr.msra.gmra.mrb[18].mxu1 %vm237_vm5, %v2163_v60 }
0x26d5   :  { %4448 = vmatpush3.bf16.msra.mxu1 %v5013_v62  ;;  %4174 = vmatprep.mubr.msk.f32.mxu1 %vm4661_vm1, %v4662_v4 }
0x26d6   :  { %4449 = vmatprep.subr.bf16.mxu1 %v4660_v0 }
0x26d9   :  { %4451 = vmatpush3.bf16.msra.mxu1 %v5026_v3 }
0x26da   :  { %4452 = vmatprep.subr.bf16.mxu1 %v4660_v0 }
0x26dc   :  { %4175 = vmatmul.mubr.msk.f32.vlgmr.msra.gmra.mrb[20].mxu1 %vm237_vm5, %v4947_v57 }
0x26dd   :  { %4454 = vmatpush3.bf16.msra.mxu1 %v5038_v7  ;;  %4185 = vmatprep.mubr.msk.f32.mxu1 %vm4661_vm1, %v4662_v4 }
0x26de   :  { %4455 = vmatprep.subr.bf16.mxu1 %v4660_v0 }
0x26e1   :  { %4457 = vmatpush3.bf16.msra.mxu1 %v5050_v11 }
0x26e2   :  { %4470 = vmatprep.subr.bf16.mxu1 %v4660_v0 }
0x27a7   :  { %v2232_v53 = vpop.f32.mrb[18].mxu1 }
0x27a8   :  { %v4522_v61 = vadd.f32 %v5078_v35, %v2232_v53  ;;  %v4143_v63 = vpop.f32.mrb[19].mxu1 }
0x27aa   :  { %v2237_v1 = vmul.f32 %v4522_v61, %v4767_v20 }
0x27ac   :  { %4624 = vtanh.f32 %v2237_v1 }
0x27b6   :  { %v4625_v5 = vpop.eup %4624 }
0x27b7   :  { %v2239_v57 = vmul.f32 %v4625_v5, %v4767_v20 }
0x27b9   :  { %v2240_v6 = vadd.f32 %v2239_v57, %v4770_v26 }
0x27bb   :  { %2243 = vrot.lane.b32.xlu0 %v2240_v6, %s4664_s18  ;;  %v2241_v33 = vmul.f32 %v2240_v6, %v2084_v31 }
0x282d   :  { %v2244_v9 = vpop.permute.xlu0 %2243 }
0x282e   :  { %v2246_v15 = vmul.f32 %v2244_v9, %v2240_v6 }
0x2830   :  { %2248 = vrot.lane.b32.xlu1 %v2246_v15, %s4665_s19 }
0x28a2   :  { %v2249_v29 = vpop.permute.xlu1 %2248 }
0x28a3   :  { %v2251_v37 = vadd.f32 %v2249_v29, %v2241_v33 }
0x28a5   :  { %4626 = vtanh.f32 %v2251_v37 }
0x28af   :  { %v4627_v13 = vpop.eup %4626 }
0x28b0   :  { %2254 = vrot.lane.b32.xlu0 %v4627_v13, %s4664_s18 }
0x2922   :  { %v2255_v16 = vpop.permute.xlu0 %2254 }
0x2923   :  { %v5211_v18 = vmul.f32 %v2255_v16, %v2240_v6 }
0x2925   :  { %2363 = vrot.lane.b32.xlu1 %v5211_v18, %s4665_s19 }
0x2997   :  { %v2364_v19 = vpop.permute.xlu1 %2363 }
0x2998   :  { %4164 = vmatmul.mubr.msk.f32.vlgmr.msra.gmra.mrb[26].mxu0 %vm237_vm5, %v2364_v19 }
0x2999   :  { %4460 = vmatpush3.bf16.msra.mxu0 %v5013_v62  ;;  %4196 = vmatprep.mubr.msk.f32.mxu0 %vm4661_vm1, %v4662_v4 }
0x299a   :  { %4461 = vmatprep.subr.bf16.mxu0 %v4660_v0 }
0x299d   :  { %4463 = vmatpush3.bf16.msra.mxu0 %v5026_v3 }
0x299e   :  { %4464 = vmatprep.subr.bf16.mxu0 %v4660_v0 }
0x29a0   :  { %4197 = vmatmul.mubr.msk.f32.vlgmr.msra.gmra.mrb[28].mxu0 %vm237_vm5, %v4966_v17 }
0x29a1   :  { %4466 = vmatpush3.bf16.msra.mxu0 %v5038_v7  ;;  %4207 = vmatprep.mubr.msk.f32.mxu0 %vm4661_vm1, %v4662_v4 }
0x29a2   :  { %4467 = vmatprep.subr.bf16.mxu0 %v4660_v0 }
0x29a5   :  { %4469 = vmatpush3.bf16.msra.mxu0 %v5050_v11 }
0x29a6   :  { %4482 = vmatprep.subr.bf16.mxu0 %v4660_v0 }
0x2a6b   :  { %v2433_v21 = vpop.f32.mrb[26].mxu0 }
0x2a6c   :  { %v4523_v22 = vadd.f32 %v5078_v35, %v2433_v21  ;;  %v4165_v23 = vpop.f32.mrb[27].mxu0 }
0x2a6e   :  { %v2438_v24 = vmul.f32 %v4523_v22, %v4767_v20 }
0x2a70   :  { %4628 = vtanh.f32 %v2438_v24 }
0x2a7a   :  { %v4629_v25 = vpop.eup %4628 }
0x2a7b   :  { %v2440_v17 = vmul.f32 %v4629_v25, %v4767_v20 }
0x2a7d   :  { %v2441_v10 = vadd.f32 %v2440_v17, %v4770_v26 }
0x2a7f   :  { %2444 = vrot.lane.b32.xlu0 %v2441_v10, %s4664_s18  ;;  %v2442_v27 = vmul.f32 %v2441_v10, %v2251_v37 }
0x2af1   :  { %v2445_v34 = vpop.permute.xlu0 %2444 }
0x2af2   :  { %v2447_v28 = vmul.f32 %v2445_v34, %v2441_v10 }
0x2af4   :  { %2449 = vrot.lane.b32.xlu1 %v2447_v28, %s4665_s19 }
0x2b66   :  { %v2450_v36 = vpop.permute.xlu1 %2449 }
0x2b67   :  { %v2452_v38 = vadd.f32 %v2450_v36, %v2442_v27 }
0x2b69   :  { %4630 = vtanh.f32 %v2452_v38 }
0x2b73   :  { %v4631_v39 = vpop.eup %4630 }
0x2b74   :  { %2455 = vrot.lane.b32.xlu0 %v4631_v39, %s4664_s18 }
0x2be6   :  { %v2456_v32 = vpop.permute.xlu0 %2455 }
0x2be7   :  { %v5237_v41 = vmul.f32 %v2456_v32, %v2441_v10 }
0x2be9   :  { %2550 = vrot.lane.b32.xlu1 %v5237_v41, %s4665_s19 }
0x2c5b   :  { %v2551_v42 = vpop.permute.xlu1 %2550 }
0x2c5c   :  { %4186 = vmatmul.mubr.msk.f32.vlgmr.msra.gmra.mrb[20].mxu1 %vm237_vm5, %v2551_v42 }
0x2c5d   :  { %4472 = vmatpush3.bf16.msra.mxu1 %v5013_v62  ;;  %4218 = vmatprep.mubr.msk.f32.mxu1 %vm4661_vm1, %v4662_v4 }
0x2c5e   :  { %4473 = vmatprep.subr.bf16.mxu1 %v4660_v0 }
0x2c61   :  { %4475 = vmatpush3.bf16.msra.mxu1 %v5026_v3 }
0x2c62   :  { %4476 = vmatprep.subr.bf16.mxu1 %v4660_v0 }
0x2c64   :  { %4219 = vmatmul.mubr.msk.f32.vlgmr.msra.gmra.mrb[22].mxu1 %vm237_vm5, %v4985_v44 }
0x2c65   :  { %4478 = vmatpush3.bf16.msra.mxu1 %v5038_v7  ;;  %4229 = vmatprep.mubr.msk.f32.mxu1 %vm4661_vm1, %v4662_v4 }
0x2c66   :  { %4479 = vmatprep.subr.bf16.mxu1 %v4660_v0 }
0x2c69   :  { %4481 = vmatpush3.bf16.msra.mxu1 %v5050_v11 }
0x2c6a   :  { %4494 = vmatprep.subr.bf16.mxu1 %v4660_v0 }
0x2d2f   :  { %v2620_v43 = vpop.f32.mrb[20].mxu1 }
0x2d30   :  { %v4524_v45 = vadd.f32 %v5078_v35, %v2620_v43  ;;  %v4187_v47 = vpop.f32.mrb[21].mxu1 }
0x2d32   :  { %v2625_v48 = vmul.f32 %v4524_v45, %v4767_v20 }
0x2d34   :  { %4632 = vtanh.f32 %v2625_v48 }
0x2d3e   :  { %v4633_v49 = vpop.eup %4632 }
0x2d3f   :  { %v2627_v44 = vmul.f32 %v4633_v49, %v4767_v20 }
0x2d41   :  { %v2628_v50 = vadd.f32 %v2627_v44, %v4770_v26 }
0x2d43   :  { %2631 = vrot.lane.b32.xlu0 %v2628_v50, %s4664_s18  ;;  %v2629_v51 = vmul.f32 %v2628_v50, %v2452_v38 }
0x2db5   :  { %v2632_v40 = vpop.permute.xlu0 %2631 }
0x2db6   :  { %v2634_v8 = vmul.f32 %v2632_v40, %v2628_v50 }
0x2db8   :  { %2636 = vrot.lane.b32.xlu1 %v2634_v8, %s4665_s19 }
0x2e2a   :  { %v2637_v52 = vpop.permute.xlu1 %2636 }
0x2e2b   :  { %v2639_v12 = vadd.f32 %v2637_v52, %v2629_v51 }
0x2e2d   :  { %4634 = vtanh.f32 %v2639_v12 }
0x2e37   :  { %v4635_v30 = vpop.eup %4634 }
0x2e38   :  { %2642 = vrot.lane.b32.xlu0 %v4635_v30, %s4664_s18 }
0x2eaa   :  { %v2643_v31 = vpop.permute.xlu0 %2642 }
0x2eab   :  { %v5263_v58 = vmul.f32 %v2643_v31, %v2628_v50 }
0x2ead   :  { %2737 = vrot.lane.b32.xlu1 %v5263_v58, %s4665_s19 }
0x2f1f   :  { %v2738_v55 = vpop.permute.xlu1 %2737 }
0x2f20   :  { %4208 = vmatmul.mubr.msk.f32.vlgmr.msra.gmra.mrb[28].mxu0 %vm237_vm5, %v2738_v55 }
0x2f21   :  { %4484 = vmatpush3.bf16.msra.mxu0 %v5013_v62  ;;  %4240 = vmatprep.mubr.msk.f32.mxu0 %vm4661_vm1, %v4662_v4 }
0x2f22   :  { %4485 = vmatprep.subr.bf16.mxu0 %v4660_v0 }
0x2f25   :  { %4487 = vmatpush3.bf16.msra.mxu0 %v5026_v3 }
0x2f26   :  { %4488 = vmatprep.subr.bf16.mxu0 %v4660_v0 }
0x2f28   :  { %4241 = vmatmul.mubr.msk.f32.vlgmr.msra.gmra.mrb[30].mxu0 %vm237_vm5, %v5021_v2 }
0x2f29   :  { %4490 = vmatpush3.bf16.msra.mxu0 %v5038_v7  ;;  %4251 = vmatprep.mubr.msk.f32.mxu0 %vm4661_vm1, %v4662_v4 }
0x2f2a   :  { %4491 = vmatprep.subr.bf16.mxu0 %v4660_v0 }
0x2f2d   :  { %4493 = vmatpush3.bf16.msra.mxu0 %v5050_v11 }
0x2f2e   :  { %4506 = vmatprep.subr.bf16.mxu0 %v4660_v0 }
0x2ff3   :  { %v2807_v59 = vpop.f32.mrb[28].mxu0 }
0x2ff4   :  { %v4525_v60 = vadd.f32 %v5078_v35, %v2807_v59  ;;  %v4209_v53 = vpop.f32.mrb[29].mxu0 }
0x2ff6   :  { %v2812_v61 = vmul.f32 %v4525_v60, %v4767_v20 }
0x2ff8   :  { %4636 = vtanh.f32 %v2812_v61 }
0x3002   :  { %v4637_v63 = vpop.eup %4636 }
0x3003   :  { %v2814_v2 = vmul.f32 %v4637_v63, %v4767_v20 }
0x3005   :  { %v2815_v1 = vadd.f32 %v2814_v2, %v4770_v26 }
0x3007   :  { %2818 = vrot.lane.b32.xlu0 %v2815_v1, %s4664_s18  ;;  %v2816_v6 = vmul.f32 %v2815_v1, %v2639_v12 }
0x3079   :  { %v2819_v5 = vpop.permute.xlu0 %2818 }
0x307a   :  { %v2821_v57 = vmul.f32 %v2819_v5, %v2815_v1 }
0x307c   :  { %2823 = vrot.lane.b32.xlu1 %v2821_v57, %s4665_s19 }
0x30ee   :  { %v2824_v9 = vpop.permute.xlu1 %2823 }
0x30ef   :  { %v2826_v15 = vadd.f32 %v2824_v9, %v2816_v6 }
0x30f1   :  { %4638 = vtanh.f32 %v2826_v15 }
0x30fb   :  { %v4639_v33 = vpop.eup %4638 }
0x30fc   :  { %2829 = vrot.lane.b32.xlu0 %v4639_v33, %s4664_s18 }
0x316e   :  { %v2830_v29 = vpop.permute.xlu0 %2829 }
0x316f   :  { %v5289_v37 = vmul.f32 %v2830_v29, %v2815_v1 }
0x3171   :  { %2924 = vrot.lane.b32.xlu1 %v5289_v37, %s4665_s19 }
0x31e3   :  { %v2925_v13 = vpop.permute.xlu1 %2924 }
0x31e4   :  { %4230 = vmatmul.mubr.msk.f32.vlgmr.msra.gmra.mrb[22].mxu1 %vm237_vm5, %v2925_v13 }
0x31e5   :  { %4496 = vmatpush3.bf16.msra.mxu1 %v5013_v62  ;;  %4262 = vmatprep.mubr.msk.f32.mxu1 %vm4661_vm1, %v4662_v4 }
0x31e6   :  { %4497 = vmatprep.subr.bf16.mxu1 %v4660_v0 }
0x31e9   :  { %4499 = vmatpush3.bf16.msra.mxu1 %v5026_v3 }
0x31ea   :  { %4500 = vmatprep.subr.bf16.mxu1 %v4660_v0 }
0x31ec   :  { %4263 = vmatmul.mubr.msk.f32.vlgmr.msra.gmra.mrb[24].mxu1 %vm237_vm5, %v5098_v54 }
0x31ed   :  { %4502 = vmatpush3.bf16.msra.mxu1 %v5038_v7  ;;  %4273 = vmatprep.mubr.msk.f32.mxu1 %vm4661_vm1, %v4662_v4 }
0x31ee   :  { %4503 = vmatprep.subr.bf16.mxu1 %v4660_v0 }
0x31f1   :  { %4505 = vmatpush3.bf16.msra.mxu1 %v5050_v11 }
0x32b7   :  { %v2994_v16 = vpop.f32.mrb[22].mxu1 }
0x32b8   :  { %v4526_v19 = vadd.f32 %v5078_v35, %v2994_v16  ;;  %v4231_v21 = vpop.f32.mrb[23].mxu1 }
0x32ba   :  { %v2999_v22 = vmul.f32 %v4526_v19, %v4767_v20 }
0x32bc   :  { %4640 = vtanh.f32 %v2999_v22 }
0x32c6   :  { %v4641_v23 = vpop.eup %4640 }
0x32c7   :  { %v3001_v24 = vmul.f32 %v4641_v23, %v4767_v20 }
0x32c9   :  { %v3002_v54 = vadd.f32 %v3001_v24, %v4770_v26 }
0x32cb   :  { %3005 = vrot.lane.b32.xlu0 %v3002_v54, %s4664_s18  ;;  %v3003_v10 = vmul.f32 %v3002_v54, %v2826_v15 }
0x333d   :  { %v3006_v25 = vpop.permute.xlu0 %3005 }
0x333e   :  { %v3008_v17 = vmul.f32 %v3006_v25, %v3002_v54 }
0x3340   :  { %3010 = vrot.lane.b32.xlu1 %v3008_v17, %s4665_s19 }
0x33b2   :  { %v3011_v34 = vpop.permute.xlu1 %3010 }
0x33b3   :  { %v3013_v28 = vadd.f32 %v3011_v34, %v3003_v10 }
0x33b5   :  { %4642 = vtanh.f32 %v3013_v28 }
0x33bf   :  { %v4643_v27 = vpop.eup %4642 }
0x33c0   :  { %3016 = vrot.lane.b32.xlu0 %v4643_v27, %s4664_s18 }
0x3432   :  { %v3017_v36 = vpop.permute.xlu0 %3016 }
0x3433   :  { %v5314_v38 = vmul.f32 %v3017_v36, %v3002_v54  ;;  %v3661_v36 = vld [vmem:[%s5422_s5] ss:$0 sm:$0xff] }
0x3435   :  { %3111 = vrot.lane.b32.xlu1 %v5314_v38, %s4665_s19 }
0x34a7   :  { %v3112_v39 = vpop.permute.xlu1 %3111 }
0x34a8   :  { %4252 = vmatmul.mubr.msk.f32.vlgmr.msra.gmra.mrb[30].mxu0 %vm237_vm5, %v3112_v39 }
0x34a9   :  { %4508 = vmatpush3.bf16.msra.mxu0 %v5013_v62  ;;  %4284 = vmatprep.mubr.msk.f32.mxu0 %vm4661_vm1, %v4662_v4 }
0x34aa   :  { %4509 = vmatprep.subr.bf16.mxu0 %v4660_v0 }
0x34ad   :  { %4511 = vmatpush3.bf16.msra.mxu0 %v5026_v3  ;;  %v1390_v3 = vmul.f32 %v5133_v56, %v4767_v20 }
0x34ae   :  { %4512 = vmatprep.subr.bf16.mxu0 %v4660_v0 }
0x357b   :  { %v3181_v32 = vpop.f32.mrb[30].mxu0 }
0x357c   :  { %v4527_v42 = vadd.f32 %v5078_v35, %v3181_v32  ;;  %v4253_v43 = vpop.f32.mrb[31].mxu0 }
0x357e   :  { %v3186_v45 = vmul.f32 %v4527_v42, %v4767_v20 }
0x3580   :  { %4644 = vtanh.f32 %v3186_v45 }
0x3581   :  { %4646 = vtanh.f32 %v1390_v3 }
0x358a   :  { %v4645_v47 = vpop.eup %4644 }
0x358b   :  { %v3188_v48 = vmul.f32 %v4645_v47, %v4767_v20  ;;  %v4647_v51 = vpop.eup %4646 }
0x358c   :  { %v1392_v52 = vmul.f32 %v4647_v51, %v4767_v20 }
0x358d   :  { %v3189_v62 = vadd.f32 %v3188_v48, %v4770_v26 }
0x358e   :  { %v1393_v30 = vadd.f32 %v1392_v52, %v4770_v26 }
0x358f   :  { %3192 = vrot.lane.b32.xlu0 %v3189_v62, %s4664_s18  ;;  %v3190_v50 = vmul.f32 %v3189_v62, %v3013_v28 }
0x3590   :  { %v1394_v53 = vmul.f32 %v1393_v30, %v5091_v46 }
0x3601   :  { %v3193_v49 = vpop.permute.xlu0 %3192 }
0x3602   :  { %v3195_v44 = vmul.f32 %v3193_v49, %v3189_v62 }
0x3604   :  { %3197 = vrot.lane.b32.xlu1 %v3195_v44, %s4665_s19 }
0x3676   :  { %v3198_v40 = vpop.permute.xlu1 %3197 }
0x3677   :  { %v3200_v8 = vadd.f32 %v3198_v40, %v3190_v50 }
0x3679   :  { %4648 = vtanh.f32 %v3200_v8 }
0x3683   :  { %v4649_v12 = vpop.eup %4648 }
0x3684   :  { %3203 = vrot.lane.b32.xlu0 %v4649_v12, %s4664_s18 }
0x3688   :  { %1396 = vrot.lane.b32.xlu0 %v1393_v30, %s4664_s18 }
0x36f6   :  { %v3204_v31 = vpop.permute.xlu0 %3203 }
0x36f7   :  { %v5337_v55 = vmul.f32 %v3204_v31, %v3189_v62 }
0x36f9   :  { %3298 = vrot.lane.b32.xlu1 %v5337_v55, %s4665_s19 }
0x36fa   :  { %v1397_v56 = vpop.permute.xlu0 %1396 }
0x36fb   :  { %v1399_v59 = vmul.f32 %v1397_v56, %v1393_v30 }
0x36fd   :  { %1401 = vrot.lane.b32.xlu0 %v1399_v59, %s4665_s19 }
0x376b   :  { %v3299_v60 = vpop.permute.xlu1 %3298 }
0x376c   :  { %4274 = vmatmul.mubr.msk.f32.vlgmr.msra.gmra.mrb[24].mxu1 %vm237_vm5, %v3299_v60 }
0x376f   :  { %v1402_v61 = vpop.permute.xlu0 %1401 }
0x3770   :  { %v1404_v63 = vadd.f32 %v1402_v61, %v1394_v53 }
0x3772   :  { %4650 = vtanh.f32 %v1404_v63 }
0x377c   :  { %v4651_v2 = vpop.eup %4650 }
0x377d   :  { %1407 = vrot.lane.b32.xlu0 %v4651_v2, %s4664_s18 }
0x37ef   :  { %v1408_v1 = vpop.permute.xlu0 %1407 }
0x37f0   :  { %v1410_v5 = vmul.f32 %v1408_v1, %v1393_v30 }
0x37f2   :  { %3415 = vrot.lane.b32.xlu0 %v1410_v5, %s4665_s19 }
0x383f   :  { %v3368_v57 = vpop.f32.mrb[24].mxu1 }
0x3840   :  { %v4528_v6 = vadd.f32 %v5078_v35, %v3368_v57  ;;  %v4275_v9 = vpop.f32.mrb[25].mxu1 }
0x3842   :  { %v3373_v15 = vmul.f32 %v4528_v6, %v4767_v20 }
0x3844   :  { %4652 = vtanh.f32 %v3373_v15 }
0x384e   :  { %v4653_v33 = vpop.eup %4652 }
0x384f   :  { %v3375_v46 = vmul.f32 %v4653_v33, %v4767_v20 }
0x3851   :  { %v3376_v29 = vadd.f32 %v3375_v46, %v4770_v26 }
0x3853   :  { %3379 = vrot.lane.b32.xlu1 %v3376_v29, %s4664_s18  ;;  %v3377_v21 = vmul.f32 %v3376_v29, %v3200_v8 }
0x3864   :  { %v3416_v13 = vpop.permute.xlu0 %3415 }
0x3865   :  { %4285 = vmatmul.mubr.msk.f32.vlgmr.msra.gmra.mrb[32].mxu0 %vm237_vm5, %v3416_v13 }
0x3866   :  { %4514 = vmatpush3.bf16.msra.mxu0 %v5038_v7  ;;  %4295 = vmatprep.mubr.msk.f32.mxu0 %vm4661_vm1, %v4662_v4 }
0x3867   :  { %4515 = vmatprep.subr.bf16.mxu0 %v4660_v0 }
0x386a   :  { %4517 = vmatpush3.bf16.msra.mxu0 %v5050_v11 }
0x38c5   :  { %v3380_v16 = vpop.permute.xlu1 %3379 }
0x38c6   :  { %v3382_v19 = vmul.f32 %v3380_v16, %v3376_v29 }
0x38c8   :  { %3384 = vrot.lane.b32.xlu1 %v3382_v19, %s4665_s19 }
0x393a   :  { %v3385_v22 = vpop.permute.xlu1 %3384 }
0x393b   :  { %v3387_v23 = vadd.f32 %v3385_v22, %v3377_v21 }
0x393d   :  { %4654 = vtanh.f32 %v3387_v23 }
0x3947   :  { %v4655_v24 = vpop.eup %4654 }
0x3948   :  { %3390 = vrot.lane.b32.xlu1 %v4655_v24, %s4664_s18 }
0x39ba   :  { %v3391_v54 = vpop.permute.xlu1 %3390 }
0x39bb   :  { %v3393_v7 = vmul.f32 %v3391_v54, %v3376_v29 }
0x39bd   :  { %3490 = vrot.lane.b32.xlu1 %v3393_v7, %s4665_s19 }
0x3a2f   :  { %v3491_v25 = vpop.permute.xlu1 %3490 }
0x3a30   :  { %4296 = vmatmul.mubr.msk.f32.vlgmr.msra.gmra.mrb[32].mxu0 %vm237_vm5, %v3491_v25 }
0x3b03   :  { %v3560_v0 = vpop.f32.mrb[32].mxu0 }
0x3b04   :  { %v4529_v11 = vadd.f32 %v5078_v35, %v3560_v0  ;;  %v4297_v17 = vpop.f32.mrb[33].mxu0 }
0x3b06   :  { %v3565_v10 = vmul.f32 %v4529_v11, %v4767_v20 }
0x3b08   :  { %4656 = vtanh.f32 %v3565_v10 }
0x3b12   :  { %v4657_v34 = vpop.eup %4656 }
0x3b13   :  { %v3567_v28 = vmul.f32 %v4657_v34, %v4767_v20 }
0x3b15   :  { %v3568_v27 = vadd.f32 %v3567_v28, %v4770_v26  ;;  %v12_v26 = vstv %s5423_s6 }
0x3b16   :  { %13 = vst [vmem:[#allocation3] sm:$0x1] %v12_v26  ;;  %v3669_v26 = vsel %vm2655_vm8, 1.0, %v4662_v4 }
0x3b17   :  { %3571 = vrot.lane.b32.xlu0 %v3568_v27, %s4664_s18 }
0x3b1b   :  { %2263 = vrot.lane.b32.xlu0 %v3661_v36, %s4666_s1 }
0x3b1d   :  { %v3662_v1 = vld [vmem:[#allocation3] ss:$0 sm:$0xff] }
0x3b89   :  { %v3572_v39 = vpop.permute.xlu0 %3571 }
0x3b8a   :  { %v3574_v32 = vmul.f32 %v3572_v39, %v3568_v27 }
0x3b8c   :  { %3576 = vrot.lane.b32.xlu1 %v3574_v32, %s4665_s19 }
0x3b8d   :  { %v2264_v35 = vpop.permute.xlu0 %2263 }
0x3b8e   :  { %v2266_v42 = vmul.f32 %v2264_v35, %v5211_v18  ;;  %v2459_v20 = vmul.f32 %v5237_v41, %v2264_v35  ;;  %v3569_v18 = vmul.f32 %v3568_v27, %v3387_v23  ;;  %v2833_v41 = vmul.f32 %v5289_v37, %v2264_v35 }
0x3b8f   :  { %v3020_v3 = vmul.f32 %v5314_v38, %v2264_v35  ;;  %v2646_v50 = vmul.f32 %v5263_v58, %v2264_v35  ;;  %v3207_v40 = vmul.f32 %v5337_v55, %v2264_v35  ;;  %v3394_v8 = vmul.f32 %v3393_v7, %v2264_v35 }
0x3b90   :  { %2268 = vrot.lane.b32.xlu1 %v2266_v42, %s4665_s19  ;;  %v4667_v37 = vmov 0   ;;  %v3666_v42 = vsel %vm2468_vm6, 1.0, %v4662_v4 }
0x3b91   :  { %4563 = vset.pattern.permute.xlu1 %v4667_v37  ;;  %4562 = vset.pattern.permute.xlu0 %v4667_v37 }
0x3b94   :  { %2461 = vrot.lane.b32.xlu1 %v2459_v20, %s4665_s19  ;;  %v3663_v20 = vsel %vm2281_vm7, 1.0, %v4662_v4 }
0x3bfe   :  { %v3577_v43 = vpop.permute.xlu1 %3576 }
0x3bff   :  { %v3579_v49 = vadd.f32 %v3577_v43, %v3569_v18  ;;  %v3675_v18 = vsel %vm3029_vm10, 1.0, %v4662_v4 }
0x3c01   :  { %4658 = vtanh.f32 %v3579_v49 }
0x3c02   :  { %v2269_v45 = vpop.permute.xlu1 %2268 }
0x3c03   :  { %v2271_v47 = vsel %vm237_vm5, %v2269_v45, 0.0  ;;  %v3672_v45 = vsel %vm2842_vm9, 1.0, %v4662_v4 }
0x3c04   :  { %2272 = vadd.xlane.f32.xlu0 %v2271_v47 }
0x3c06   :  { %v2462_v48 = vpop.permute.xlu1 %2461 }
0x3c07   :  { %v2464_v62 = vsel %vm237_vm5, %v2462_v48, 0.0 }
0x3c08   :  { %2465 = vadd.xlane.f32.xlu1 %v2464_v62 }
0x3c0b   :  { %v4659_v44 = vpop.eup %4658 }
0x3c19   :  { %2835 = vrot.lane.b32.xlu1 %v2833_v41, %s4665_s19 }
0x3c1a   :  { %3582 = vrot.lane.b32.xlu0 %v4659_v44, %s4664_s18  ;;  %v3678_v44 = vsel %vm3216_vm11, 1.0, %v4662_v4 }
0x3c1d   :  { %3022 = vrot.lane.b32.xlu1 %v3020_v3, %s4665_s19 }
0x3c1e   :  { %2648 = vrot.lane.b32.xlu0 %v2646_v50, %s4665_s19 }
0x3c21   :  { %3209 = vrot.lane.b32.xlu1 %v3207_v40, %s4665_s19  ;;  %v3681_v40 = vsel %vm3403_vm12, 1.0, %v4662_v4 }
0x3c25   :  { %3396 = vrot.lane.b32.xlu1 %v3394_v8, %s4665_s19 }
0x3c91   :  { %v2273_v51 = vpop.xlane.xlu0 %2272 }
0x3c92   :  { %v2280_v5 = vadd.f32 %v3662_v1, %v2273_v51 }
0x3c95   :  { %v3583_v52 = vpop.permute.xlu0 %3582  ;;  %v2466_v31 = vpop.xlane.xlu1 %2465 }
0x3c96   :  { %v3585_v12 = vmul.f32 %v3583_v52, %v3568_v27  ;;  %v2467_v57 = vadd.f32 %v3662_v1, %v2466_v31  ;;  %v3684_v52 = vsel %vm3595_vm13, 1.0, %v4662_v4 }
0x3c98   :  { %v3586_v38 = vmul.f32 %v3585_v12, %v2264_v35  ;;  %v2478_v33 = vadd.f32 %v2467_v57, %v2280_v5 }
0x3c99   :  { %v2649_v30 = vpop.permute.xlu0 %2648  ;;  %v2836_v55 = vpop.permute.xlu1 %2835 }
0x3c9a   :  { %v2651_v58 = vsel %vm237_vm5, %v2649_v30, 0.0  ;;  %3588 = vrot.lane.b32.xlu1 %v3586_v38, %s4665_s19  ;;  %v2838_v59 = vsel %vm237_vm5, %v2836_v55, 0.0  ;;  %v3685_v55 = vsel %vm3607_vm14, 1.0, %v4662_v4 }
0x3c9b   :  { %2652 = vadd.xlane.f32.xlu0 %v2651_v58 }
0x3c9d   :  { %v3023_v56 = vpop.permute.xlu1 %3022 }
0x3c9e   :  { %v3025_v53 = vsel %vm237_vm5, %v3023_v56, 0.0 }
0x3ca1   :  { %v3210_v60 = vpop.permute.xlu1 %3209 }
0x3ca2   :  { %v3212_v61 = vsel %vm237_vm5, %v3210_v60, 0.0 }
0x3ca5   :  { %v3397_v63 = vpop.permute.xlu1 %3396 }
0x3ca6   :  { %v3399_v2 = vsel %vm237_vm5, %v3397_v63, 0.0 }
0x3cbe   :  { %2839 = vadd.xlane.f32.xlu1 %v2838_v59 }
0x3cc2   :  { %3026 = vadd.xlane.f32.xlu1 %v3025_v53 }
0x3cc6   :  { %3213 = vadd.xlane.f32.xlu1 %v3212_v61 }
0x3cca   :  { %3400 = vadd.xlane.f32.xlu1 %v3399_v2 }
0x3cdb   :  { %2286 = vperm.xlu1 %4563, %v2280_v5  }
0x3cdf   :  { %2473 = vperm.xlu1 %4563, %v2467_v57  }
0x3d0c   :  { %v3589_v15 = vpop.permute.xlu1 %3588 }
0x3d0d   :  { %v3591_v11 = vsel %vm237_vm5, %v3589_v15, 0.0 }
0x3d28   :  { %v2653_v6 = vpop.xlane.xlu0 %2652 }
0x3d29   :  { %v2654_v9 = vadd.f32 %v3662_v1, %v2653_v6 }
0x3d2b   :  { %2660 = vperm.xlu1 %4563, %v2654_v9   ;;  %v2665_v29 = vadd.f32 %v2654_v9, %v2478_v33 }
0x3d4b   :  { %v2840_v46 = vpop.xlane.xlu1 %2839 }
0x3d4c   :  { %v2841_v13 = vadd.f32 %v3662_v1, %v2840_v46 }
0x3d4e   :  { %v2852_v16 = vadd.f32 %v2841_v13, %v2665_v29  ;;  %2847 = vperm.xlu0 %4562, %v2841_v13  }
0x3d4f   :  { %v3027_v19 = vpop.xlane.xlu1 %3026 }
0x3d50   :  { %v3028_v21 = vadd.f32 %v3662_v1, %v3027_v19 }
0x3d52   :  { %v3039_v22 = vadd.f32 %v3028_v21, %v2852_v16  ;;  %3034 = vperm.xlu1 %4563, %v3028_v21  }
0x3d53   :  { %v3214_v23 = vpop.xlane.xlu1 %3213 }
0x3d54   :  { %v3215_v24 = vadd.f32 %v3662_v1, %v3214_v23 }
0x3d56   :  { %v3226_v54 = vadd.f32 %v3215_v24, %v3039_v22  ;;  %3221 = vperm.xlu1 %4563, %v3215_v24  }
0x3d57   :  { %v3401_v7 = vpop.xlane.xlu1 %3400 }
0x3d58   :  { %v3402_v25 = vadd.f32 %v3662_v1, %v3401_v7 }
0x3d5a   :  { %v3413_v0 = vadd.f32 %v3402_v25, %v3226_v54  ;;  %3408 = vperm.xlu1 %4563, %v3402_v25  }
0x3d5b   :  { %v2287_v36 = vpop.permute.xlu1 %2286 }
0x3d5c   :  { %v2289_v48 = vmul.f32 %v3663_v20, %v2287_v36 }
0x3d5f   :  { %v2474_v39 = vpop.permute.xlu1 %2473 }
0x3d60   :  { %v2476_v43 = vmul.f32 %v3666_v42, %v2474_v39 }
0x3d62   :  { %v2477_v49 = vadd.f32 %v2476_v43, %v2289_v48 }
0x3d6d   :  { %3592 = vadd.xlane.f32.xlu0 %v3591_v11 }
0x3daa   :  { %v2661_v32 = vpop.permute.xlu1 %2660 }
0x3dab   :  { %v2663_v62 = vmul.f32 %v3669_v26, %v2661_v32 }
0x3dad   :  { %v2664_v3 = vadd.f32 %v2663_v62, %v2477_v49 }
0x3dcd   :  { %v2848_v17 = vpop.permute.xlu0 %2847 }
0x3dce   :  { %v2850_v41 = vmul.f32 %v3672_v45, %v2848_v17 }
0x3dd0   :  { %v2851_v37 = vadd.f32 %v2850_v41, %v2664_v3 }
0x3dd1   :  { %v3035_v35 = vpop.permute.xlu1 %3034 }
0x3dd2   :  { %v3037_v50 = vmul.f32 %v3675_v18, %v3035_v35 }
0x3dd4   :  { %v3038_v12 = vadd.f32 %v3037_v50, %v2851_v37 }
0x3dd5   :  { %v3222_v47 = vpop.permute.xlu1 %3221 }
0x3dd6   :  { %v3224_v51 = vmul.f32 %v3678_v44, %v3222_v47 }
0x3dd8   :  { %v3225_v58 = vadd.f32 %v3224_v51, %v3038_v12 }
0x3dd9   :  { %v3409_v8 = vpop.permute.xlu1 %3408 }
0x3dda   :  { %v3411_v38 = vmul.f32 %v3681_v40, %v3409_v8 }
0x3ddc   :  { %v3412_v56 = vadd.f32 %v3411_v38, %v3225_v58 }
0x3dfa   :  { %v3593_v10 = vpop.xlane.xlu0 %3592 }
0x3dfb   :  { %v3594_v34 = vadd.f32 %v3662_v1, %v3593_v10 }
0x3dfd   :  { %v3605_v28 = vadd.f32 %v3594_v34, %v3413_v0  ;;  %3600 = vperm.xlu1 %4563, %v3594_v34  }
0x3dff   :  { %v3606_v27 = vmul.f32 0.125, %v3605_v28 }
0x3e01   :  { %3612 = vperm.xlu1 %4563, %v3606_v27  }
0x3e7c   :  { %v3601_v30 = vpop.permute.xlu1 %3600 }
0x3e7d   :  { %v3603_v31 = vmul.f32 %v3684_v52, %v3601_v30 }
0x3e7f   :  { %v3604_v60 = vadd.f32 %v3603_v31, %v3412_v56 }
0x3e80   :  { %v3613_v59 = vpop.permute.xlu1 %3612 }
0x3e81   :  { %v3615_v53 = vmul.f32 %v3685_v55, %v3613_v59 }
0x3e83   :  { %v3616_v61 = vadd.f32 %v3615_v53, %v3604_v60 }
0x3e85   :  { %3617 = vst [vmem:[%s5424_s7] sm:$0xff] %v3616_v61 }

</bundles_post_ra>
